<compile_context>
chip_gen: v7x
topology: tpu7x:2x2x1
jax: 0.10.0
libtpu: 0.0.40
codegen_flags: <defaults>
</compile_context>

<pallas_src>
import math

import jax
import jax.numpy as jnp
from jax.experimental import pallas as pl
from jax.experimental.pallas import tpu as pltpu

NUM_FEATURES = 128  # stand-in for resnet50's num_features (2048); multiple of 128
EMB_DIM = 32        # nn.Embedding(2, 32)
BBLK = 8            # images per grid step (multiple of 8 -> sublane-dense blocks)


# ---------------------------------------------------------------------------
# Fused kernel (one block of BBLK images per grid step):
#   h         = relu(x_blk @ W + b)                      (BBLK*HW, F)  MXU + VPU
#   feat_sum  = sum_hw h  (GAP, linear -> reduce first)  (BBLK, F)
#   img_logit = sum_f feat_sum * w_img  (1/HW folded)    (BBLK, 1)
#   emb_logit = select(blur>0, t1, t0)  (precomputed emb@w_emb + b_fc)
#   out       = sigmoid(img_logit + emb_logit)           (BBLK, 1)
# ---------------------------------------------------------------------------
def fused_kernel(x_ref,      # (BBLK*HW, C)  bf16
                 w_ref,      # (C, F)        bf16
                 bc_ref,     # (1, F)        f32
                 wimg_ref,   # (1, F)        f32  (FC image weights, 1/HW folded in)
                 tbl_ref,    # (1, 2)        f32  (emb_table @ w_fc_emb + b_fc)
                 blur_ref,   # (BBLK, 1)     f32  (0.0 / 1.0)
                 o_ref):     # (BBLK, 1)     f32
    # Stand-in backbone: 1x1 channel-mix "conv" over the whole batch block as a
    # single MXU matmul (bf16 operands, f32 accumulation).
    h = jnp.dot(x_ref[...], w_ref[...],
                preferred_element_type=jnp.float32)          # (BBLK*HW, F) f32
    h = jnp.maximum(h + bc_ref[...], 0.0)                    # bias + ReLU (f32 VPU)

    bblk = o_ref.shape[0]
    n, f = h.shape
    hw = n // bblk

    # GAP is linear -> reduce over HW FIRST, then apply the image half of the
    # FC head.  The 1/HW scale is already folded into wimg_ref at init.
    feat_sum = jnp.sum(h.reshape(bblk, hw, f), axis=1)       # (BBLK, F)
    img_logit = jnp.sum(feat_sum * wimg_ref[...],
                        axis=-1, keepdims=True)              # (BBLK, 1)

    # Blur-embedding half of the FC head (+ fc bias), precomputed at init to a
    # 2-entry table; exact {0,1} lookup via a vector select.
    emb_logit = jnp.where(blur_ref[...] > 0.0,
                          tbl_ref[:, 1:2], tbl_ref[:, 0:1])  # (BBLK, 1)

    # Dropout is identity in eval mode.
    o_ref[...] = jax.nn.sigmoid(img_logit + emb_logit).astype(o_ref.dtype)


# ---------------------------------------------------------------------------
# Wrapper
# ---------------------------------------------------------------------------
def baseline4_forward(img, blur, params, bblk=BBLK):
    B, C, H, W = img.shape
    HW = H * W
    B_pad = pl.cdiv(B, bblk) * bblk

    # Layout plumbing (pure reshape/transpose, done once by XLA outside the
    # kernel): (B, C, H, W) -> (B*HW, C) so one MXU matmul covers the whole
    # batch block and the F=128 feature axis lands lane-dense in h.
    x = img.reshape(B, C, HW).transpose(0, 2, 1).reshape(B * HW, C)
    blur_col = blur.astype(jnp.float32).reshape(B, 1)
    if B_pad != B:
        x = jnp.pad(x, ((0, (B_pad - B) * HW), (0, 0)))
        blur_col = jnp.pad(blur_col, ((0, B_pad - B), (0, 0)))
    x = x.astype(jnp.bfloat16)   # bf16 MXU operand; accumulation stays f32

    # NOTE(production scale): with the real 2048-feature backbone, tile F in
    # 256-wide chunks and cap BBLK so h = (BBLK*HW, F_tile) fits VMEM; v7x's
    # 64 MiB VMEM needs roughly half the tile sizes of v5e/v6e (set
    # vmem_limit_bytes via CompilerParams).  At this toy size everything fits.
    out = pl.pallas_call(
        fused_kernel,
        out_shape=jax.ShapeDtypeStruct((B_pad, 1), jnp.float32),
        grid=(B_pad // bblk,),
        in_specs=[
            pl.BlockSpec((bblk * HW, C), lambda i: (i, 0)),
            pl.BlockSpec((C, NUM_FEATURES), lambda i: (0, 0)),
            pl.BlockSpec((1, NUM_FEATURES), lambda i: (0, 0)),
            pl.BlockSpec((1, NUM_FEATURES), lambda i: (0, 0)),
            pl.BlockSpec((1, 2), lambda i: (0, 0)),
            pl.BlockSpec((bblk, 1), lambda i: (i, 0)),
        ],
        out_specs=pl.BlockSpec((bblk, 1), lambda i: (i, 0)),
        # Batch-block axis is parallel; at realistic B (>= 2*BBLK) this shards
        # across both v7x TensorCores (v5e/v6e have a single TC).
        compiler_params=pltpu.CompilerParams(
            dimension_semantics=("parallel",)),
    )(x, params["w_conv"], params["b_conv"], params["w_fc_img"],
      params["emb_logit_tbl"], blur_col)

    return out[:B]                               # (B, 1)


def init_params(key, c_in, hw):
    k1, k2, k3, k4, k5 = jax.random.split(key, 5)
    w_conv = jax.random.normal(k1, (c_in, NUM_FEATURES), jnp.float32) * 0.05
    b_conv = jax.random.normal(k2, (NUM_FEATURES,), jnp.float32) * 0.05
    emb_table = jax.random.normal(k3, (2, EMB_DIM), jnp.float32)  # nn.Embedding ~ N(0,1)
    fan_in = NUM_FEATURES + EMB_DIM
    w_fc = jax.random.normal(k4, (fan_in, 1), jnp.float32) / math.sqrt(fan_in)
    b_fc = jax.random.normal(k5, (1, 1), jnp.float32) * 0.01

    w_fc_img = w_fc[:NUM_FEATURES, :]                    # (F, 1)
    w_fc_emb = w_fc[NUM_FEATURES:, :]                    # (EMB_DIM, 1)
    # Precompute the embedding half of the head (incl. fc bias): (1, 2) table.
    emb_logit_tbl = (emb_table @ w_fc_emb + b_fc).reshape(1, 2)

    return {
        "w_conv": w_conv.astype(jnp.bfloat16),                      # (C, F) bf16
        "b_conv": b_conv.reshape(1, NUM_FEATURES),                  # (1, F) f32
        # image half of the FC weight, GAP's 1/HW folded in at init
        "w_fc_img": w_fc_img.reshape(1, NUM_FEATURES) / float(hw),  # (1, F) f32
        "emb_logit_tbl": emb_logit_tbl,                             # (1, 2) f32
    }


if __name__ == "__main__":
    key = jax.random.PRNGKey(0)
    k_img, k_par = jax.random.split(key)

    B, C, H, W = 2, 4, 16, 16
    img = jax.random.normal(k_img, (B, C, H, W), jnp.float32)
    blur = jnp.array([0, 1], dtype=jnp.int32)            # batch['blur']
    params = init_params(k_par, C, H * W)

    out = baseline4_forward(img, blur, params)
    out = jax.block_until_ready(out)
    assert out.shape == (B, 1)
    assert bool(jnp.all((out >= 0.0) & (out <= 1.0)))    # sigmoid range
    print("KERNEL_OK")
</pallas_src>

<mosaic_0001>
module attributes {stable_mosaic.version = 11 : i64} {
  func.func @fused_kernel(%arg0: i32, %arg1: memref<2048x4xbf16, #tpu.memory_space<vmem>>, %arg2: memref<4x128xbf16, #tpu.memory_space<vmem>>, %arg3: memref<1x128xf32, #tpu.memory_space<vmem>>, %arg4: memref<1x128xf32, #tpu.memory_space<vmem>>, %arg5: memref<1x2xf32, #tpu.memory_space<vmem>>, %arg6: memref<8x1xf32, #tpu.memory_space<vmem>>, %arg7: memref<8x1xf32, #tpu.memory_space<vmem>>) attributes {dimension_semantics = [#tpu.dimension_semantics<parallel>], iteration_bounds = array<i64: 1>, scalar_prefetch = 0 : i64, scratch_operands = 0 : i64, tpu.core_type = #tpu.core_type<tc>, window_params = [{transform_indices = @transform_0, window_bounds = array<i64: 2048, 4>}, {pipeline_mode = #tpu.pipeline_mode<synchronous>, transform_indices = @transform_1, window_bounds = array<i64: 4, 128>}, {pipeline_mode = #tpu.pipeline_mode<synchronous>, transform_indices = @transform_2, window_bounds = array<i64: 1, 128>}, {pipeline_mode = #tpu.pipeline_mode<synchronous>, transform_indices = @transform_3, window_bounds = array<i64: 1, 128>}, {pipeline_mode = #tpu.pipeline_mode<synchronous>, transform_indices = @transform_4, window_bounds = array<i64: 1, 2>}, {transform_indices = @transform_5, window_bounds = array<i64: 8, 1>}, {transform_indices = @transform_6, window_bounds = array<i64: 8, 1>}]} {
    %c0 = arith.constant 0 : index
    %c0_0 = arith.constant 0 : index
    %0 = vector.load %arg1[%c0, %c0_0] : memref<2048x4xbf16, #tpu.memory_space<vmem>>, vector<2048x4xbf16>
    %c0_1 = arith.constant 0 : index
    %c0_2 = arith.constant 0 : index
    %1 = vector.load %arg2[%c0_1, %c0_2] : memref<4x128xbf16, #tpu.memory_space<vmem>>, vector<4x128xbf16>
    %cst = arith.constant dense<0.000000e+00> : vector<2048x128xf32>
    %2 = tpu.matmul %0, %1, %cst {dimension_numbers = #tpu.dot_dimension_numbers<[1], [0], [0], [1], [0, 0, 1, 1], [], []>} : vector<2048x4xbf16>, vector<4x128xbf16>, vector<2048x128xf32> -> vector<2048x128xf32>
    %c0_3 = arith.constant 0 : index
    %c0_4 = arith.constant 0 : index
    %3 = vector.load %arg3[%c0_3, %c0_4] : memref<1x128xf32, #tpu.memory_space<vmem>>, vector<1x128xf32>
    %4 = vector.broadcast %3 : vector<1x128xf32> to vector<2048x128xf32>
    %5 = arith.addf %2, %4 : vector<2048x128xf32>
    %cst_5 = arith.constant 0.000000e+00 : f32
    %6 = vector.broadcast %cst_5 : f32 to vector<2048x128xf32>
    %7 = arith.maximumf %5, %6 : vector<2048x128xf32>
    %8 = vector.shape_cast %7 : vector<2048x128xf32> to vector<8x256x128xf32>
    %cst_6 = arith.constant dense<0.000000e+00> : vector<8x128xf32>
    %9 = vector.multi_reduction <add>, %8, %cst_6 [1] : vector<8x256x128xf32> to vector<8x128xf32>
    %c0_7 = arith.constant 0 : index
    %c0_8 = arith.constant 0 : index
    %10 = vector.load %arg4[%c0_7, %c0_8] : memref<1x128xf32, #tpu.memory_space<vmem>>, vector<1x128xf32>
    %11 = vector.broadcast %10 : vector<1x128xf32> to vector<8x128xf32>
    %12 = arith.mulf %9, %11 : vector<8x128xf32>
    %cst_9 = arith.constant dense<0.000000e+00> : vector<8xf32>
    %13 = vector.multi_reduction <add>, %12, %cst_9 [1] : vector<8x128xf32> to vector<8xf32>
    %14 = vector.shape_cast %13 : vector<8xf32> to vector<8x1xf32>
    %c0_10 = arith.constant 0 : index
    %c0_11 = arith.constant 0 : index
    %15 = vector.load %arg6[%c0_10, %c0_11] : memref<8x1xf32, #tpu.memory_space<vmem>>, vector<8x1xf32>
    %cst_12 = arith.constant 0.000000e+00 : f32
    %16 = vector.broadcast %cst_12 : f32 to vector<8x1xf32>
    %17 = arith.cmpf ogt, %15, %16 : vector<8x1xf32>
    %c0_13 = arith.constant 0 : index
    %c1 = arith.constant 1 : index
    %18 = vector.load %arg5[%c0_13, %c1] : memref<1x2xf32, #tpu.memory_space<vmem>>, vector<1x1xf32>
    %c0_14 = arith.constant 0 : index
    %c0_15 = arith.constant 0 : index
    %19 = vector.load %arg5[%c0_14, %c0_15] : memref<1x2xf32, #tpu.memory_space<vmem>>, vector<1x1xf32>
    %20 = vector.shape_cast %18 : vector<1x1xf32> to vector<1x1xf32>
    %21 = vector.broadcast %20 : vector<1x1xf32> to vector<8x1xf32>
    %22 = vector.shape_cast %19 : vector<1x1xf32> to vector<1x1xf32>
    %23 = vector.broadcast %22 : vector<1x1xf32> to vector<8x1xf32>
    %24 = arith.select %17, %21, %23 : vector<8x1xi1>, vector<8x1xf32>
    %25 = arith.addf %14, %24 : vector<8x1xf32>
    %26 = arith.negf %25 : vector<8x1xf32>
    %27 = math.exp %26 : vector<8x1xf32>
    %cst_16 = arith.constant 1.000000e+00 : f32
    %28 = vector.broadcast %cst_16 : f32 to vector<8x1xf32>
    %29 = arith.addf %28, %27 : vector<8x1xf32>
    %30 = arith.divf %28, %29 : vector<8x1xf32>
    %c0_17 = arith.constant 0 : index
    %c0_18 = arith.constant 0 : index
    %31 = vector.load %arg7[%c0_17, %c0_18] : memref<8x1xf32, #tpu.memory_space<vmem>>, vector<8x1xf32>
    tpu.vector_store %arg7[%c0_17, %c0_18], %30 {strides = array<i32>} : memref<8x1xf32, #tpu.memory_space<vmem>>, vector<8x1xf32>,
    return
  }
  func.func @transform_0(%arg0: i32) -> (i32, i32) {
    %c0_i32 = arith.constant 0 : i32
    %c0_i32_0 = arith.constant 0 : i32
    return %arg0, %c0_i32 : i32, i32
  }
  func.func @transform_1(%arg0: i32) -> (i32, i32) {
    %c0_i32 = arith.constant 0 : i32
    %c0_i32_0 = arith.constant 0 : i32
    %c0_i32_1 = arith.constant 0 : i32
    return %c0_i32, %c0_i32_0 : i32, i32
  }
  func.func @transform_2(%arg0: i32) -> (i32, i32) {
    %c0_i32 = arith.constant 0 : i32
    %c0_i32_0 = arith.constant 0 : i32
    %c0_i32_1 = arith.constant 0 : i32
    return %c0_i32, %c0_i32_0 : i32, i32
  }
  func.func @transform_3(%arg0: i32) -> (i32, i32) {
    %c0_i32 = arith.constant 0 : i32
    %c0_i32_0 = arith.constant 0 : i32
    %c0_i32_1 = arith.constant 0 : i32
    return %c0_i32, %c0_i32_0 : i32, i32
  }
  func.func @transform_4(%arg0: i32) -> (i32, i32) {
    %c0_i32 = arith.constant 0 : i32
    %c0_i32_0 = arith.constant 0 : i32
    %c0_i32_1 = arith.constant 0 : i32
    return %c0_i32, %c0_i32_0 : i32, i32
  }
  func.func @transform_5(%arg0: i32) -> (i32, i32) {
    %c0_i32 = arith.constant 0 : i32
    %c0_i32_0 = arith.constant 0 : i32
    return %arg0, %c0_i32 : i32, i32
  }
  func.func @transform_6(%arg0: i32) -> (i32, i32) {
    %c0_i32 = arith.constant 0 : i32
    %c0_i32_0 = arith.constant 0 : i32
    return %arg0, %c0_i32 : i32, i32
  }
}

</mosaic_0001>

<bundles_post_ra>
// kernel: tpu_custom_call.1
= control target key start
LH: loop header
LB: loop body
LE: loop exit
PB: predicated region body
PF: predicated region fallthrough
CT: control target
= control target key end

     0   :  { %vm1313_vm0 = vcmask 1041408   ;;  %vm928_vm1 = vcmask 31744   ;;  %vm2950_vm2 = vcmask 1041409   ;;  %vm2953_vm3 = vcmask 1042434   ;;  %s4640_s1 = inlined_call_operand.vmem [shape: bf16[4,128], index: 1, kind: input, shape index: {}]   ;;  %s4641_s0 = inlined_call_operand.vmem [shape: bf16[2048,4], index: 0, kind: input, shape index: {}]   ;;  %s4642_s2 = inlined_call_operand.vmem [shape: f32[1,128], index: 2, kind: input, shape index: {}]   ;;  %s4643_s3 = inlined_call_operand.vmem [shape: f32[1,128], index: 3, kind: input, shape index: {}]   ;;  %s4644_s4 = inlined_call_operand.vmem [shape: f32[1,2], index: 4, kind: input, shape index: {}]   ;;  %s4645_s5 = inlined_call_operand.vmem [shape: f32[8,1], index: 5, kind: input, shape index: {}]   ;;  %s4646_s6 = inlined_call_operand.vmem [shape: f32[8,1], index: 6, kind: output, shape index: {}]  }
   0x1   :  { %v280_v0 = vld [vmem:[%s4640_s1] sm:$0x3]  ;;  %v3653_v4 = vld [vmem:[%s4641_s0 + $0x8] sm:$0xff]   ;;  %v3655_v6 = vld [vmem:[%s4641_s0 + $0x10] sm:$0xff]   ;;  %vm2956_vm4 = vcmask 1043459   ;;  %vm2959_vm5 = vcmask 1044484  }
   0x2   :  { %3648 = vmatprep.subr.msk.bf16.mxu0 %vm1313_vm0, %v280_v0  ;;  %3649 = vmatprep.subr.msk.bf16.mxu1 %vm1313_vm0, %v280_v0  ;;  %v1315_v1 = vsel %vm1313_vm0, %v280_v0, 0  ;;  %v3651_v2 = vld [vmem:[%s4641_s0] sm:$0xff]   ;;  %v3654_v5 = vld [vmem:[%s4641_s0 + $0x208] sm:$0xff]   ;;  %v3656_v7 = vld [vmem:[%s4641_s0 + $0x210] sm:$0xff]   ;;  %vm2962_vm6 = vcmask 1045509   ;;  %vm2965_vm7 = vcmask 1046534  }
   0x3   :  { %3389 = vmatpush3.bf16.msra.mxu0 %v1315_v1  ;;  %3647 = vmatpush3.bf16.msra.mxu1 %v1315_v1  ;;  %v3652_v3 = vld [vmem:[%s4641_s0 + $0x200] sm:$0xff]   ;;  %v3657_v8 = vld [vmem:[%s4641_s0 + $0x18] sm:$0xff]   ;;  %v3661_v12 = vld [vmem:[%s4641_s0 + $0x28] sm:$0xff]   ;;  %vm2968_vm8 = vcmask 1047559   ;;  %vm2993_vm10 = vcmask 7168  }
   0x4   :  { %3390 = vmatprep.mubr.msk.bf16.mxu0 %vm928_vm1, %v3651_v2  ;;  %3518 = vmatprep.mubr.msk.bf16.mxu1 %vm928_vm1, %v3652_v3  ;;  %v3658_v9 = vld [vmem:[%s4641_s0 + $0x218] sm:$0xff]   ;;  %v3659_v10 = vld [vmem:[%s4641_s0 + $0x20] sm:$0xff]   ;;  %v3662_v13 = vld [vmem:[%s4641_s0 + $0x228] sm:$0xff]  }
   0x5   :  { %v3660_v11 = vld [vmem:[%s4641_s0 + $0x220] sm:$0xff]   ;;  %v3663_v14 = vld [vmem:[%s4641_s0 + $0x30] sm:$0xff]   ;;  %v3665_v16 = vld [vmem:[%s4641_s0 + $0x38] sm:$0xff]  }
   0x6   :  { %3391 = vmatmul.mubr.msk.bf16.vlgmr.msra.gmra.mrb[0].mxu0 %vm928_vm1, %v3653_v4  ;;  %3519 = vmatmul.mubr.msk.bf16.vlgmr.msra.gmra.mrb[0].mxu1 %vm928_vm1, %v3654_v5  ;;  %v3664_v15 = vld [vmem:[%s4641_s0 + $0x230] sm:$0xff]   ;;  %v3666_v17 = vld [vmem:[%s4641_s0 + $0x238] sm:$0xff]   ;;  %v3667_v18 = vld [vmem:[%s4641_s0 + $0x40] sm:$0xff]  }
   0x7   :  { %3394 = vmatprep.mubr.msk.bf16.mxu0 %vm928_vm1, %v3655_v6  ;;  %3522 = vmatprep.mubr.msk.bf16.mxu1 %vm928_vm1, %v3656_v7  ;;  %v3668_v19 = vld [vmem:[%s4641_s0 + $0x240] sm:$0xff]   ;;  %v3669_v20 = vld [vmem:[%s4641_s0 + $0x48] sm:$0xff]   ;;  %v3671_v22 = vld [vmem:[%s4641_s0 + $0x50] sm:$0xff]  }
   0x8   :  { %v3670_v21 = vld [vmem:[%s4641_s0 + $0x248] sm:$0xff]   ;;  %v3672_v23 = vld [vmem:[%s4641_s0 + $0x250] sm:$0xff]   ;;  %v3673_v24 = vld [vmem:[%s4641_s0 + $0x58] sm:$0xff]  }
   0x9   :  { %v3674_v25 = vld [vmem:[%s4641_s0 + $0x258] sm:$0xff]   ;;  %v3675_v26 = vld [vmem:[%s4641_s0 + $0x60] sm:$0xff]   ;;  %v3677_v28 = vld [vmem:[%s4641_s0 + $0x68] sm:$0xff]  }
   0xa   :  { %v3676_v27 = vld [vmem:[%s4641_s0 + $0x260] sm:$0xff]   ;;  %v3678_v29 = vld [vmem:[%s4641_s0 + $0x268] sm:$0xff]   ;;  %v3679_v30 = vld [vmem:[%s4641_s0 + $0x70] sm:$0xff]  }
   0xb   :  { %v3680_v31 = vld [vmem:[%s4641_s0 + $0x270] sm:$0xff]   ;;  %v3681_v32 = vld [vmem:[%s4641_s0 + $0x78] sm:$0xff]   ;;  %v3683_v34 = vld [vmem:[%s4641_s0 + $0x80] sm:$0xff]  }
   0xc   :  { %v3682_v33 = vld [vmem:[%s4641_s0 + $0x278] sm:$0xff]   ;;  %v3684_v35 = vld [vmem:[%s4641_s0 + $0x280] sm:$0xff]   ;;  %v3685_v36 = vld [vmem:[%s4641_s0 + $0x88] sm:$0xff]  }
   0xd   :  { %v3686_v37 = vld [vmem:[%s4641_s0 + $0x288] sm:$0xff]   ;;  %v3687_v38 = vld [vmem:[%s4641_s0 + $0x90] sm:$0xff]   ;;  %v3689_v40 = vld [vmem:[%s4641_s0 + $0x98] sm:$0xff]  }
   0xe   :  { %3395 = vmatmul.mubr.msk.bf16.gmra.mrb[4].mxu0 %vm928_vm1, %v3657_v8  ;;  %3523 = vmatmul.mubr.msk.bf16.gmra.mrb[4].mxu1 %vm928_vm1, %v3658_v9  ;;  %v3688_v39 = vld [vmem:[%s4641_s0 + $0x290] sm:$0xff]   ;;  %v3690_v41 = vld [vmem:[%s4641_s0 + $0x298] sm:$0xff]   ;;  %v3691_v42 = vld [vmem:[%s4641_s0 + $0xa0] sm:$0xff]  }
   0xf   :  { %3398 = vmatprep.mubr.msk.bf16.mxu0 %vm928_vm1, %v3659_v10  ;;  %3526 = vmatprep.mubr.msk.bf16.mxu1 %vm928_vm1, %v3660_v11  ;;  %v3692_v43 = vld [vmem:[%s4641_s0 + $0x2a0] sm:$0xff]   ;;  %v3693_v44 = vld [vmem:[%s4641_s0 + $0xa8] sm:$0xff]   ;;  %v3695_v46 = vld [vmem:[%s4641_s0 + $0xb0] sm:$0xff]  }
  0x10   :  { %v3694_v45 = vld [vmem:[%s4641_s0 + $0x2a8] sm:$0xff]   ;;  %v3696_v47 = vld [vmem:[%s4641_s0 + $0x2b0] sm:$0xff]   ;;  %v3697_v48 = vld [vmem:[%s4641_s0 + $0xb8] sm:$0xff]  }
  0x11   :  { %v3698_v49 = vld [vmem:[%s4641_s0 + $0x2b8] sm:$0xff]   ;;  %v3699_v50 = vld [vmem:[%s4641_s0 + $0xc0] sm:$0xff]   ;;  %v3701_v52 = vld [vmem:[%s4641_s0 + $0xc8] sm:$0xff]  }
  0x12   :  { %v3700_v51 = vld [vmem:[%s4641_s0 + $0x2c0] sm:$0xff]   ;;  %v3702_v53 = vld [vmem:[%s4641_s0 + $0x2c8] sm:$0xff]   ;;  %v3703_v54 = vld [vmem:[%s4641_s0 + $0xd0] sm:$0xff]  }
  0x13   :  { %v3704_v55 = vld [vmem:[%s4641_s0 + $0x2d0] sm:$0xff]   ;;  %v3705_v56 = vld [vmem:[%s4641_s0 + $0xd8] sm:$0xff]   ;;  %v3707_v58 = vld [vmem:[%s4641_s0 + $0xe0] sm:$0xff]  }
  0x14   :  { %v3706_v57 = vld [vmem:[%s4641_s0 + $0x2d8] sm:$0xff]   ;;  %v3708_v59 = vld [vmem:[%s4641_s0 + $0x2e0] sm:$0xff]   ;;  %v3709_v60 = vld [vmem:[%s4641_s0 + $0xe8] sm:$0xff]  }
  0x15   :  { %v3710_v61 = vld [vmem:[%s4641_s0 + $0x2e8] sm:$0xff]   ;;  %v3711_v62 = vld [vmem:[%s4641_s0 + $0xf0] sm:$0xff]   ;;  %v3713_v0 = vld [vmem:[%s4641_s0 + $0xf8] sm:$0xff]  }
  0x16   :  { %3399 = vmatmul.mubr.msk.bf16.gmra.mrb[8].mxu0 %vm928_vm1, %v3661_v12  ;;  %3527 = vmatmul.mubr.msk.bf16.gmra.mrb[8].mxu1 %vm928_vm1, %v3662_v13  ;;  %v3712_v63 = vld [vmem:[%s4641_s0 + $0x2f0] sm:$0xff]   ;;  %v3714_v1 = vld [vmem:[%s4641_s0 + $0x2f8] sm:$0xff]   ;;  %v3715_v2 = vld [vmem:[%s4641_s0 + $0x100] sm:$0xff]  }
  0x17   :  { %3402 = vmatprep.mubr.msk.bf16.mxu0 %vm928_vm1, %v3663_v14  ;;  %3530 = vmatprep.mubr.msk.bf16.mxu1 %vm928_vm1, %v3664_v15  ;;  %v3716_v3 = vld [vmem:[%s4641_s0 + $0x300] sm:$0xff]   ;;  %v3717_v4 = vld [vmem:[%s4641_s0 + $0x108] sm:$0xff]   ;;  %v3719_v6 = vld [vmem:[%s4641_s0 + $0x110] sm:$0xff]  }
  0x18   :  { %v3718_v5 = vld [vmem:[%s4641_s0 + $0x308] sm:$0xff]   ;;  %v3720_v7 = vld [vmem:[%s4641_s0 + $0x310] sm:$0xff]   ;;  %v3721_v8 = vld [vmem:[%s4641_s0 + $0x118] sm:$0xff]  }
  0x19   :  { %v3722_v9 = vld [vmem:[%s4641_s0 + $0x318] sm:$0xff]   ;;  %v3723_v10 = vld [vmem:[%s4641_s0 + $0x120] sm:$0xff]   ;;  %v3725_v12 = vld [vmem:[%s4641_s0 + $0x128] sm:$0xff]  }
  0x1a   :  { %v3724_v11 = vld [vmem:[%s4641_s0 + $0x320] sm:$0xff]   ;;  %v3726_v13 = vld [vmem:[%s4641_s0 + $0x328] sm:$0xff]   ;;  %v3727_v14 = vld [vmem:[%s4641_s0 + $0x130] sm:$0xff]  }
  0x1b   :  { %v3728_v15 = vld [vmem:[%s4641_s0 + $0x330] sm:$0xff]  }
  0x1e   :  { %3403 = vmatmul.mubr.msk.bf16.gmra.mrb[12].mxu0 %vm928_vm1, %v3665_v16  ;;  %3531 = vmatmul.mubr.msk.bf16.gmra.mrb[12].mxu1 %vm928_vm1, %v3666_v17  ;;  %v3729_v16 = vld [vmem:[%s4641_s0 + $0x138] sm:$0xff]  }
  0x1f   :  { %3406 = vmatprep.mubr.msk.bf16.mxu0 %vm928_vm1, %v3667_v18  ;;  %3534 = vmatprep.mubr.msk.bf16.mxu1 %vm928_vm1, %v3668_v19  ;;  %v3730_v17 = vld [vmem:[%s4641_s0 + $0x338] sm:$0xff]   ;;  %v3731_v18 = vld [vmem:[%s4641_s0 + $0x140] sm:$0xff]  }
  0x20   :  { %v3732_v19 = vld [vmem:[%s4641_s0 + $0x340] sm:$0xff]  }
  0x26   :  { %3407 = vmatmul.mubr.msk.bf16.gmra.mrb[16].mxu0 %vm928_vm1, %v3669_v20  ;;  %3535 = vmatmul.mubr.msk.bf16.gmra.mrb[16].mxu1 %vm928_vm1, %v3670_v21  ;;  %v3733_v20 = vld [vmem:[%s4641_s0 + $0x148] sm:$0xff]  }
  0x27   :  { %3410 = vmatprep.mubr.msk.bf16.mxu0 %vm928_vm1, %v3671_v22  ;;  %3538 = vmatprep.mubr.msk.bf16.mxu1 %vm928_vm1, %v3672_v23  ;;  %v3734_v21 = vld [vmem:[%s4641_s0 + $0x348] sm:$0xff]   ;;  %v3735_v22 = vld [vmem:[%s4641_s0 + $0x150] sm:$0xff]  }
  0x28   :  { %v3736_v23 = vld [vmem:[%s4641_s0 + $0x350] sm:$0xff]  }
  0x2e   :  { %3411 = vmatmul.mubr.msk.bf16.gmra.mrb[20].mxu0 %vm928_vm1, %v3673_v24  ;;  %3539 = vmatmul.mubr.msk.bf16.gmra.mrb[20].mxu1 %vm928_vm1, %v3674_v25  ;;  %v3737_v24 = vld [vmem:[%s4641_s0 + $0x158] sm:$0xff]  }
  0x2f   :  { %3414 = vmatprep.mubr.msk.bf16.mxu0 %vm928_vm1, %v3675_v26  ;;  %3542 = vmatprep.mubr.msk.bf16.mxu1 %vm928_vm1, %v3676_v27  ;;  %v3738_v25 = vld [vmem:[%s4641_s0 + $0x358] sm:$0xff]   ;;  %v3739_v26 = vld [vmem:[%s4641_s0 + $0x160] sm:$0xff]  }
  0x30   :  { %v3740_v27 = vld [vmem:[%s4641_s0 + $0x360] sm:$0xff]  }
  0x36   :  { %3415 = vmatmul.mubr.msk.bf16.gmra.mrb[24].mxu0 %vm928_vm1, %v3677_v28  ;;  %3543 = vmatmul.mubr.msk.bf16.gmra.mrb[24].mxu1 %vm928_vm1, %v3678_v29  ;;  %v3741_v28 = vld [vmem:[%s4641_s0 + $0x168] sm:$0xff]  }
  0x37   :  { %3418 = vmatprep.mubr.msk.bf16.mxu0 %vm928_vm1, %v3679_v30  ;;  %3546 = vmatprep.mubr.msk.bf16.mxu1 %vm928_vm1, %v3680_v31  ;;  %v3742_v29 = vld [vmem:[%s4641_s0 + $0x368] sm:$0xff]   ;;  %v3743_v30 = vld [vmem:[%s4641_s0 + $0x170] sm:$0xff]  }
  0x38   :  { %v3744_v31 = vld [vmem:[%s4641_s0 + $0x370] sm:$0xff]  }
  0x3e   :  { %3419 = vmatmul.mubr.msk.bf16.gmra.mrb[28].mxu0 %vm928_vm1, %v3681_v32  ;;  %3547 = vmatmul.mubr.msk.bf16.gmra.mrb[28].mxu1 %vm928_vm1, %v3682_v33  ;;  %v3745_v32 = vld [vmem:[%s4641_s0 + $0x178] sm:$0xff]  }
  0x3f   :  { %3422 = vmatprep.mubr.msk.bf16.mxu0 %vm928_vm1, %v3683_v34  ;;  %3550 = vmatprep.mubr.msk.bf16.mxu1 %vm928_vm1, %v3684_v35  ;;  %v3746_v33 = vld [vmem:[%s4641_s0 + $0x378] sm:$0xff]   ;;  %v3747_v34 = vld [vmem:[%s4641_s0 + $0x180] sm:$0xff]  }
  0x40   :  { %v3748_v35 = vld [vmem:[%s4641_s0 + $0x380] sm:$0xff]  }
  0x46   :  { %3423 = vmatmul.mubr.msk.bf16.gmra.mrb[32].mxu0 %vm928_vm1, %v3685_v36  ;;  %3551 = vmatmul.mubr.msk.bf16.gmra.mrb[32].mxu1 %vm928_vm1, %v3686_v37  ;;  %v3749_v36 = vld [vmem:[%s4641_s0 + $0x188] sm:$0xff]  }
  0x47   :  { %3426 = vmatprep.mubr.msk.bf16.mxu0 %vm928_vm1, %v3687_v38  ;;  %3554 = vmatprep.mubr.msk.bf16.mxu1 %vm928_vm1, %v3688_v39  ;;  %v3750_v37 = vld [vmem:[%s4641_s0 + $0x388] sm:$0xff]   ;;  %v3751_v38 = vld [vmem:[%s4641_s0 + $0x190] sm:$0xff]  }
  0x48   :  { %v3752_v39 = vld [vmem:[%s4641_s0 + $0x390] sm:$0xff]  }
  0x4e   :  { %3427 = vmatmul.mubr.msk.bf16.gmra.mrb[36].mxu0 %vm928_vm1, %v3689_v40  ;;  %3555 = vmatmul.mubr.msk.bf16.gmra.mrb[36].mxu1 %vm928_vm1, %v3690_v41  ;;  %v3753_v40 = vld [vmem:[%s4641_s0 + $0x198] sm:$0xff]  }
  0x4f   :  { %3430 = vmatprep.mubr.msk.bf16.mxu0 %vm928_vm1, %v3691_v42  ;;  %3558 = vmatprep.mubr.msk.bf16.mxu1 %vm928_vm1, %v3692_v43  ;;  %v3754_v41 = vld [vmem:[%s4641_s0 + $0x398] sm:$0xff]   ;;  %v3755_v42 = vld [vmem:[%s4641_s0 + $0x1a0] sm:$0xff]  }
  0x50   :  { %v3756_v43 = vld [vmem:[%s4641_s0 + $0x3a0] sm:$0xff]  }
  0x56   :  { %3431 = vmatmul.mubr.msk.bf16.gmra.mrb[40].mxu0 %vm928_vm1, %v3693_v44  ;;  %3559 = vmatmul.mubr.msk.bf16.gmra.mrb[40].mxu1 %vm928_vm1, %v3694_v45  ;;  %v3757_v44 = vld [vmem:[%s4641_s0 + $0x1a8] sm:$0xff]  }
  0x57   :  { %3434 = vmatprep.mubr.msk.bf16.mxu0 %vm928_vm1, %v3695_v46  ;;  %3562 = vmatprep.mubr.msk.bf16.mxu1 %vm928_vm1, %v3696_v47  ;;  %v3758_v45 = vld [vmem:[%s4641_s0 + $0x3a8] sm:$0xff]   ;;  %v3759_v46 = vld [vmem:[%s4641_s0 + $0x1b0] sm:$0xff]  }
  0x58   :  { %v3760_v47 = vld [vmem:[%s4641_s0 + $0x3b0] sm:$0xff]  }
  0x5e   :  { %3435 = vmatmul.mubr.msk.bf16.gmra.mrb[44].mxu0 %vm928_vm1, %v3697_v48  ;;  %3563 = vmatmul.mubr.msk.bf16.gmra.mrb[44].mxu1 %vm928_vm1, %v3698_v49  ;;  %v4267_v48 = vld [vmem:[%s4642_s2] ss:$0 sm:$0xff] }
  0x5f   :  { %3438 = vmatprep.mubr.msk.bf16.mxu0 %vm928_vm1, %v3699_v50  ;;  %3566 = vmatprep.mubr.msk.bf16.mxu1 %vm928_vm1, %v3700_v51 }
  0x66   :  { %3439 = vmatmul.mubr.msk.bf16.gmra.mrb[48].mxu0 %vm928_vm1, %v3701_v52  ;;  %3567 = vmatmul.mubr.msk.bf16.gmra.mrb[48].mxu1 %vm928_vm1, %v3702_v53  ;;  %v3761_v52 = vld [vmem:[%s4641_s0 + $0x1b8] sm:$0xff]  }
  0x67   :  { %3442 = vmatprep.mubr.msk.bf16.mxu0 %vm928_vm1, %v3703_v54  ;;  %3570 = vmatprep.mubr.msk.bf16.mxu1 %vm928_vm1, %v3704_v55 }
  0x6e   :  { %3443 = vmatmul.mubr.msk.bf16.gmra.mrb[52].mxu0 %vm928_vm1, %v3705_v56  ;;  %3571 = vmatmul.mubr.msk.bf16.gmra.mrb[52].mxu1 %vm928_vm1, %v3706_v57  ;;  %v3762_v56 = vld [vmem:[%s4641_s0 + $0x3b8] sm:$0xff]   ;;  %v3763_v57 = vld [vmem:[%s4641_s0 + $0x1c0] sm:$0xff]  }
  0x6f   :  { %3446 = vmatprep.mubr.msk.bf16.mxu0 %vm928_vm1, %v3707_v58  ;;  %3574 = vmatprep.mubr.msk.bf16.mxu1 %vm928_vm1, %v3708_v59 }
  0x76   :  { %3447 = vmatmul.mubr.msk.bf16.gmra.mrb[56].mxu0 %vm928_vm1, %v3709_v60  ;;  %3575 = vmatmul.mubr.msk.bf16.gmra.mrb[56].mxu1 %vm928_vm1, %v3710_v61 }
  0x77   :  { %3450 = vmatprep.mubr.msk.bf16.mxu0 %vm928_vm1, %v3711_v62  ;;  %3578 = vmatprep.mubr.msk.bf16.mxu1 %vm928_vm1, %v3712_v63  ;;  %v3764_v62 = vld [vmem:[%s4641_s0 + $0x3c0] sm:$0xff]  }
  0x7e   :  { %3451 = vmatmul.mubr.msk.bf16.gmra.mrb[60].mxu0 %vm928_vm1, %v3713_v0  ;;  %3579 = vmatmul.mubr.msk.bf16.gmra.mrb[60].mxu1 %vm928_vm1, %v3714_v1 }
  0x7f   :  { %3454 = vmatprep.mubr.msk.bf16.mxu0 %vm928_vm1, %v3715_v2  ;;  %3582 = vmatprep.mubr.msk.bf16.mxu1 %vm928_vm1, %v3716_v3 }
  0x86   :  { %3455 = vmatmul.mubr.msk.bf16.gmra.mrb[64].mxu0 %vm928_vm1, %v3717_v4  ;;  %3583 = vmatmul.mubr.msk.bf16.gmra.mrb[64].mxu1 %vm928_vm1, %v3718_v5 }
  0x87   :  { %3458 = vmatprep.mubr.msk.bf16.mxu0 %vm928_vm1, %v3719_v6  ;;  %3586 = vmatprep.mubr.msk.bf16.mxu1 %vm928_vm1, %v3720_v7 }
  0x8e   :  { %3459 = vmatmul.mubr.msk.bf16.gmra.mrb[68].mxu0 %vm928_vm1, %v3721_v8  ;;  %3587 = vmatmul.mubr.msk.bf16.gmra.mrb[68].mxu1 %vm928_vm1, %v3722_v9 }
  0x8f   :  { %3462 = vmatprep.mubr.msk.bf16.mxu0 %vm928_vm1, %v3723_v10  ;;  %3590 = vmatprep.mubr.msk.bf16.mxu1 %vm928_vm1, %v3724_v11 }
  0x96   :  { %3463 = vmatmul.mubr.msk.bf16.gmra.mrb[72].mxu0 %vm928_vm1, %v3725_v12  ;;  %3591 = vmatmul.mubr.msk.bf16.gmra.mrb[72].mxu1 %vm928_vm1, %v3726_v13 }
  0x97   :  { %3466 = vmatprep.mubr.msk.bf16.mxu0 %vm928_vm1, %v3727_v14  ;;  %3594 = vmatprep.mubr.msk.bf16.mxu1 %vm928_vm1, %v3728_v15 }
  0x9e   :  { %3467 = vmatmul.mubr.msk.bf16.gmra.mrb[76].mxu0 %vm928_vm1, %v3729_v16  ;;  %3595 = vmatmul.mubr.msk.bf16.gmra.mrb[76].mxu1 %vm928_vm1, %v3730_v17  ;;  %v3765_v16 = vld [vmem:[%s4641_s0 + $0x1c8] sm:$0xff]  }
  0x9f   :  { %3470 = vmatprep.mubr.msk.bf16.mxu0 %vm928_vm1, %v3731_v18  ;;  %3598 = vmatprep.mubr.msk.bf16.mxu1 %vm928_vm1, %v3732_v19 }
  0xa6   :  { %3471 = vmatmul.mubr.msk.bf16.gmra.mrb[80].mxu0 %vm928_vm1, %v3733_v20  ;;  %3599 = vmatmul.mubr.msk.bf16.gmra.mrb[80].mxu1 %vm928_vm1, %v3734_v21 }
  0xa7   :  { %3474 = vmatprep.mubr.msk.bf16.mxu0 %vm928_vm1, %v3735_v22  ;;  %3602 = vmatprep.mubr.msk.bf16.mxu1 %vm928_vm1, %v3736_v23  ;;  %v3766_v22 = vld [vmem:[%s4641_s0 + $0x3c8] sm:$0xff]   ;;  %v3767_v23 = vld [vmem:[%s4641_s0 + $0x1d0] sm:$0xff]  }
  0xae   :  { %3475 = vmatmul.mubr.msk.bf16.gmra.mrb[84].mxu0 %vm928_vm1, %v3737_v24  ;;  %3603 = vmatmul.mubr.msk.bf16.gmra.mrb[84].mxu1 %vm928_vm1, %v3738_v25 }
  0xaf   :  { %3478 = vmatprep.mubr.msk.bf16.mxu0 %vm928_vm1, %v3739_v26  ;;  %3606 = vmatprep.mubr.msk.bf16.mxu1 %vm928_vm1, %v3740_v27 }
  0xb6   :  { %3479 = vmatmul.mubr.msk.bf16.gmra.mrb[88].mxu0 %vm928_vm1, %v3741_v28  ;;  %3607 = vmatmul.mubr.msk.bf16.gmra.mrb[88].mxu1 %vm928_vm1, %v3742_v29  ;;  %v3768_v29 = vld [vmem:[%s4641_s0 + $0x3d0] sm:$0xff]  }
  0xb7   :  { %3482 = vmatprep.mubr.msk.bf16.mxu0 %vm928_vm1, %v3743_v30  ;;  %3610 = vmatprep.mubr.msk.bf16.mxu1 %vm928_vm1, %v3744_v31 }
  0xbe   :  { %3483 = vmatmul.mubr.msk.bf16.gmra.mrb[92].mxu0 %vm928_vm1, %v3745_v32  ;;  %3611 = vmatmul.mubr.msk.bf16.gmra.mrb[92].mxu1 %vm928_vm1, %v3746_v33 }
  0xbf   :  { %3486 = vmatprep.mubr.msk.bf16.mxu0 %vm928_vm1, %v3747_v34  ;;  %3614 = vmatprep.mubr.msk.bf16.mxu1 %vm928_vm1, %v3748_v35 }
  0xc6   :  { %3487 = vmatmul.mubr.msk.bf16.gmra.mrb[96].mxu0 %vm928_vm1, %v3749_v36  ;;  %3615 = vmatmul.mubr.msk.bf16.gmra.mrb[96].mxu1 %vm928_vm1, %v3750_v37 }
  0xc7   :  { %3490 = vmatprep.mubr.msk.bf16.mxu0 %vm928_vm1, %v3751_v38  ;;  %3618 = vmatprep.mubr.msk.bf16.mxu1 %vm928_vm1, %v3752_v39 }
  0xce   :  { %3491 = vmatmul.mubr.msk.bf16.gmra.mrb[100].mxu0 %vm928_vm1, %v3753_v40  ;;  %3619 = vmatmul.mubr.msk.bf16.gmra.mrb[100].mxu1 %vm928_vm1, %v3754_v41 }
  0xcf   :  { %3494 = vmatprep.mubr.msk.bf16.mxu0 %vm928_vm1, %v3755_v42  ;;  %3622 = vmatprep.mubr.msk.bf16.mxu1 %vm928_vm1, %v3756_v43 }
  0xd6   :  { %3495 = vmatmul.mubr.msk.bf16.gmra.mrb[104].mxu0 %vm928_vm1, %v3757_v44  ;;  %3623 = vmatmul.mubr.msk.bf16.gmra.mrb[104].mxu1 %vm928_vm1, %v3758_v45 }
  0xd7   :  { %3498 = vmatprep.mubr.msk.bf16.mxu0 %vm928_vm1, %v3759_v46  ;;  %3626 = vmatprep.mubr.msk.bf16.mxu1 %vm928_vm1, %v3760_v47 }
  0xd9   :  { %v3392_v49 = vpop.f32.mrb[0].mxu0  ;;  %v3520_v50 = vpop.f32.mrb[0].mxu1 }
  0xda   :  { %v1351_v51 = vpop.f32.mrb[1].mxu0  ;;  %v1863_v54 = vpop.f32.mrb[1].mxu1  ;;  %v1872_v58 = vadd.f32 %v3520_v50, %v4267_v48  ;;  %v1360_v63 = vadd.f32 %v3392_v49, %v4267_v48 }
  0xdb   :  { %v1352_v53 = vadd.f32 %v4267_v48, %v1351_v51  ;;  %v3393_v55 = vpop.f32.mrb[2].mxu0  ;;  %v1864_v59 = vadd.f32 %v4267_v48, %v1863_v54  ;;  %v3521_v60 = vpop.f32.mrb[2].mxu1 }
  0xdc   :  { %v1354_v61 = vpop.f32.mrb[3].mxu0  ;;  %v1866_v1 = vpop.f32.mrb[3].mxu1  ;;  %v1363_v5 = vadd.f32 %v3393_v55, %v4267_v48  ;;  %v2504_v7 = vmax.f32 %v1872_v58, 0.0  ;;  %v1875_v8 = vadd.f32 %v3521_v60, %v4267_v48  ;;  %v2376_v10 = vmax.f32 %v1360_v63, 0.0  ;;  %v3771_v58 = vld [vmem:[%s4641_s0 + $0x1e0] sm:$0xff]  }
  0xdd   :  { %v1355_v0 = vadd.f32 %v4267_v48, %v1354_v61  ;;  %v2502_v2 = vmax.f32 %v1864_v59, 0.0  ;;  %v1867_v3 = vadd.f32 %v4267_v48, %v1866_v1  ;;  %v2374_v4 = vmax.f32 %v1352_v53, 0.0 }
  0xde   :  { %3499 = vmatmul.mubr.msk.bf16.gmra.mrb[108].mxu0 %vm928_vm1, %v3761_v52  ;;  %3627 = vmatmul.mubr.msk.bf16.gmra.mrb[108].mxu1 %vm928_vm1, %v3762_v56  ;;  %v2377_v17 = vmax.f32 %v1363_v5, 0.0  ;;  %v2505_v24 = vmax.f32 %v1875_v8, 0.0  ;;  %v3769_v52 = vld [vmem:[%s4641_s0 + $0x1d8] sm:$0xff]  }
  0xdf   :  { %v2375_v6 = vmax.f32 %v1355_v0, 0.0  ;;  %3502 = vmatprep.mubr.msk.bf16.mxu0 %vm928_vm1, %v3763_v57  ;;  %v2503_v9 = vmax.f32 %v1867_v3, 0.0  ;;  %3630 = vmatprep.mubr.msk.bf16.mxu1 %vm928_vm1, %v3764_v62  ;;  %v3770_v57 = vld [vmem:[%s4641_s0 + $0x3d8] sm:$0xff]   ;;  %v3772_v0 = vld [vmem:[%s4641_s0 + $0x3e0] sm:$0xff]  }
  0xe1   :  { %v2630_v11 = vadd.f32 %v2375_v6, %v2374_v4  ;;  %v3396_v12 = vpop.f32.mrb[4].mxu0  ;;  %v2778_v13 = vadd.f32 %v2503_v9, %v2502_v2  ;;  %v3524_v14 = vpop.f32.mrb[4].mxu1 }
  0xe2   :  { %v1367_v15 = vpop.f32.mrb[5].mxu0  ;;  %v1879_v20 = vpop.f32.mrb[5].mxu1  ;;  %v1888_v30 = vadd.f32 %v3524_v14, %v4267_v48  ;;  %v1376_v34 = vadd.f32 %v3396_v12, %v4267_v48 }
  0xe3   :  { %v2631_v18 = vadd.f32 %v2630_v11, %v2376_v10  ;;  %v1368_v19 = vadd.f32 %v4267_v48, %v1367_v15  ;;  %v3397_v21 = vpop.f32.mrb[6].mxu0  ;;  %v2779_v25 = vadd.f32 %v2778_v13, %v2504_v7  ;;  %v1880_v26 = vadd.f32 %v4267_v48, %v1879_v20  ;;  %v3525_v27 = vpop.f32.mrb[6].mxu1 }
  0xe4   :  { %v1370_v28 = vpop.f32.mrb[7].mxu0  ;;  %v1882_v33 = vpop.f32.mrb[7].mxu1  ;;  %v1379_v41 = vadd.f32 %v3397_v21, %v4267_v48  ;;  %v2508_v43 = vmax.f32 %v1888_v30, 0.0  ;;  %v1891_v44 = vadd.f32 %v3525_v27, %v4267_v48  ;;  %v2380_v47 = vmax.f32 %v1376_v34, 0.0  ;;  %v3775_v30 = vld [vmem:[%s4641_s0 + $0x1f0] sm:$0xff]  }
  0xe5   :  { %v2378_v31 = vmax.f32 %v1368_v19, 0.0  ;;  %v2632_v32 = vadd.f32 %v2631_v18, %v2377_v17  ;;  %v2506_v35 = vmax.f32 %v1880_v26, 0.0  ;;  %v2780_v36 = vadd.f32 %v2779_v25, %v2505_v24  ;;  %v3773_v24 = vld [vmem:[%s4641_s0 + $0x1e8] sm:$0xff]  }
  0xe6   :  { %v1371_v37 = vadd.f32 %v4267_v48, %v1370_v28  ;;  %3503 = vmatmul.mubr.msk.bf16.gmra.mrb[112].mxu0 %vm928_vm1, %v3765_v16  ;;  %v1883_v39 = vadd.f32 %v4267_v48, %v1882_v33  ;;  %3631 = vmatmul.mubr.msk.bf16.gmra.mrb[112].mxu1 %vm928_vm1, %v3766_v22  ;;  %v2381_v59 = vmax.f32 %v1379_v41, 0.0  ;;  %v2509_v1 = vmax.f32 %v1891_v44, 0.0 }
  0xe7   :  { %v2633_v38 = vadd.f32 %v2632_v32, %v2378_v31  ;;  %3506 = vmatprep.mubr.msk.bf16.mxu0 %vm928_vm1, %v3767_v23  ;;  %v2781_v40 = vadd.f32 %v2780_v36, %v2506_v35  ;;  %3634 = vmatprep.mubr.msk.bf16.mxu1 %vm928_vm1, %v3768_v29  ;;  %v3774_v29 = vld [vmem:[%s4641_s0 + $0x3e8] sm:$0xff]   ;;  %v3776_v36 = vld [vmem:[%s4641_s0 + $0x3f0] sm:$0xff]  }
  0xe8   :  { %v2379_v42 = vmax.f32 %v1371_v37, 0.0  ;;  %v2507_v45 = vmax.f32 %v1883_v39, 0.0 }
  0xe9   :  { %v3400_v46 = vpop.f32.mrb[8].mxu0  ;;  %v3528_v50 = vpop.f32.mrb[8].mxu1 }
  0xea   :  { %v2634_v49 = vadd.f32 %v2633_v38, %v2379_v42  ;;  %v1383_v51 = vpop.f32.mrb[9].mxu0  ;;  %v2782_v53 = vadd.f32 %v2781_v40, %v2507_v45  ;;  %v1895_v55 = vpop.f32.mrb[9].mxu1  ;;  %v1904_v3 = vadd.f32 %v3528_v50, %v4267_v48  ;;  %v1392_v6 = vadd.f32 %v3400_v46, %v4267_v48 }
  0xeb   :  { %v1384_v54 = vadd.f32 %v4267_v48, %v1383_v51  ;;  %v3401_v56 = vpop.f32.mrb[10].mxu0  ;;  %v1896_v61 = vadd.f32 %v4267_v48, %v1895_v55  ;;  %v3529_v62 = vpop.f32.mrb[10].mxu1 }
  0xec   :  { %v2635_v60 = vadd.f32 %v2634_v49, %v2380_v47  ;;  %v1386_v63 = vpop.f32.mrb[11].mxu0  ;;  %v2783_v2 = vadd.f32 %v2782_v53, %v2508_v43  ;;  %v1898_v5 = vpop.f32.mrb[11].mxu1  ;;  %v1395_v13 = vadd.f32 %v3401_v56, %v4267_v48  ;;  %v2512_v15 = vmax.f32 %v1904_v3, 0.0 }
  0xed   :  { %v2382_v4 = vmax.f32 %v1384_v54, 0.0  ;;  %v2510_v8 = vmax.f32 %v1896_v61, 0.0  ;;  %v1387_v9 = vadd.f32 %v4267_v48, %v1386_v63  ;;  %v1899_v11 = vadd.f32 %v4267_v48, %v1898_v5  ;;  %v3777_v61 = vld [vmem:[%s4641_s0 + $0x1f8] sm:$0xff]  }
  0xee   :  { %v2636_v7 = vadd.f32 %v2635_v60, %v2381_v59  ;;  %3507 = vmatmul.mubr.msk.bf16.gmra.mrb[116].mxu0 %vm928_vm1, %v3769_v52  ;;  %v2784_v10 = vadd.f32 %v2783_v2, %v2509_v1  ;;  %3635 = vmatmul.mubr.msk.bf16.gmra.mrb[116].mxu1 %vm928_vm1, %v3770_v57  ;;  %v1907_v17 = vadd.f32 %v3529_v62, %v4267_v48  ;;  %v2384_v20 = vmax.f32 %v1392_v6, 0.0  ;;  %v3778_v2 = vld [vmem:[%s4641_s0 + $0x3f8] sm:$0xff]  }
  0xef   :  { %3510 = vmatprep.mubr.msk.bf16.mxu0 %vm928_vm1, %v3771_v58  ;;  %v2383_v14 = vmax.f32 %v1387_v9, 0.0  ;;  %3638 = vmatprep.mubr.msk.bf16.mxu1 %vm928_vm1, %v3772_v0  ;;  %v2511_v18 = vmax.f32 %v1899_v11, 0.0  ;;  %v2385_v31 = vmax.f32 %v1395_v13, 0.0 }
  0xf0   :  { %v2637_v12 = vadd.f32 %v2636_v7, %v2382_v4  ;;  %v2785_v16 = vadd.f32 %v2784_v10, %v2510_v8  ;;  %v2513_v37 = vmax.f32 %v1907_v17, 0.0 }
  0xf1   :  { %v3404_v19 = vpop.f32.mrb[12].mxu0  ;;  %v3532_v22 = vpop.f32.mrb[12].mxu1 }
  0xf2   :  { %v2638_v21 = vadd.f32 %v2637_v12, %v2383_v14  ;;  %v1399_v23 = vpop.f32.mrb[13].mxu0  ;;  %v2786_v25 = vadd.f32 %v2785_v16, %v2511_v18  ;;  %v1911_v27 = vpop.f32.mrb[13].mxu1  ;;  %v1920_v39 = vadd.f32 %v3532_v22, %v4267_v48  ;;  %v1408_v42 = vadd.f32 %v3404_v19, %v4267_v48 }
  0xf3   :  { %v1400_v26 = vadd.f32 %v4267_v48, %v1399_v23  ;;  %v3405_v28 = vpop.f32.mrb[14].mxu0  ;;  %v1912_v33 = vadd.f32 %v4267_v48, %v1911_v27  ;;  %v3533_v34 = vpop.f32.mrb[14].mxu1 }
  0xf4   :  { %v2639_v32 = vadd.f32 %v2638_v21, %v2384_v20  ;;  %v1402_v35 = vpop.f32.mrb[15].mxu0  ;;  %v2787_v38 = vadd.f32 %v2786_v25, %v2512_v15  ;;  %v1914_v41 = vpop.f32.mrb[15].mxu1  ;;  %v1411_v50 = vadd.f32 %v3405_v28, %v4267_v48  ;;  %v2516_v52 = vmax.f32 %v1920_v39, 0.0 }
  0xf5   :  { %v2386_v40 = vmax.f32 %v1400_v26, 0.0  ;;  %v2514_v44 = vmax.f32 %v1912_v33, 0.0  ;;  %v1403_v45 = vadd.f32 %v4267_v48, %v1402_v35  ;;  %v1915_v47 = vadd.f32 %v4267_v48, %v1914_v41 }
  0xf6   :  { %v2640_v43 = vadd.f32 %v2639_v32, %v2385_v31  ;;  %3511 = vmatmul.mubr.msk.bf16.gmra.mrb[120].mxu0 %vm928_vm1, %v3773_v24  ;;  %v2788_v46 = vadd.f32 %v2787_v38, %v2513_v37  ;;  %3639 = vmatmul.mubr.msk.bf16.gmra.mrb[120].mxu1 %vm928_vm1, %v3774_v29  ;;  %v1923_v54 = vadd.f32 %v3533_v34, %v4267_v48  ;;  %v2388_v57 = vmax.f32 %v1408_v42, 0.0 }
  0xf7   :  { %3514 = vmatprep.mubr.msk.bf16.mxu0 %vm928_vm1, %v3775_v30  ;;  %v2387_v51 = vmax.f32 %v1403_v45, 0.0  ;;  %3642 = vmatprep.mubr.msk.bf16.mxu1 %vm928_vm1, %v3776_v36  ;;  %v2515_v55 = vmax.f32 %v1915_v47, 0.0  ;;  %v2389_v3 = vmax.f32 %v1411_v50, 0.0 }
  0xf8   :  { %v2641_v49 = vadd.f32 %v2640_v43, %v2386_v40  ;;  %v2789_v53 = vadd.f32 %v2788_v46, %v2514_v44  ;;  %v2517_v8 = vmax.f32 %v1923_v54, 0.0 }
  0xf9   :  { %v3408_v56 = vpop.f32.mrb[16].mxu0  ;;  %v3536_v59 = vpop.f32.mrb[16].mxu1 }
  0xfa   :  { %v2642_v58 = vadd.f32 %v2641_v49, %v2387_v51  ;;  %v1415_v60 = vpop.f32.mrb[17].mxu0  ;;  %v2790_v62 = vadd.f32 %v2789_v53, %v2515_v55  ;;  %v1927_v0 = vpop.f32.mrb[17].mxu1  ;;  %v1936_v10 = vadd.f32 %v3536_v59, %v4267_v48  ;;  %v1424_v13 = vadd.f32 %v3408_v56, %v4267_v48 }
  0xfb   :  { %v1416_v63 = vadd.f32 %v4267_v48, %v1415_v60  ;;  %v3409_v1 = vpop.f32.mrb[18].mxu0  ;;  %v1928_v5 = vadd.f32 %v4267_v48, %v1927_v0  ;;  %v3537_v6 = vpop.f32.mrb[18].mxu1 }
  0xfc   :  { %v2643_v4 = vadd.f32 %v2642_v58, %v2388_v57  ;;  %v1418_v7 = vpop.f32.mrb[19].mxu0  ;;  %v2791_v9 = vadd.f32 %v2790_v62, %v2516_v52  ;;  %v1930_v12 = vpop.f32.mrb[19].mxu1  ;;  %v1427_v20 = vadd.f32 %v3409_v1, %v4267_v48  ;;  %v2520_v22 = vmax.f32 %v1936_v10, 0.0 }
  0xfd   :  { %v2390_v11 = vmax.f32 %v1416_v63, 0.0  ;;  %v2518_v15 = vmax.f32 %v1928_v5, 0.0  ;;  %v1419_v16 = vadd.f32 %v4267_v48, %v1418_v7  ;;  %v1931_v18 = vadd.f32 %v4267_v48, %v1930_v12 }
  0xfe   :  { %v2644_v14 = vadd.f32 %v2643_v4, %v2389_v3  ;;  %3515 = vmatmul.mubr.msk.bf16.gmra.mrb[124].mxu0 %vm928_vm1, %v3777_v61  ;;  %v2792_v17 = vadd.f32 %v2791_v9, %v2517_v8  ;;  %3643 = vmatmul.mubr.msk.bf16.gmra.mrb[124].mxu1 %vm928_vm1, %v3778_v2  ;;  %v1939_v24 = vadd.f32 %v3537_v6, %v4267_v48  ;;  %v2392_v27 = vmax.f32 %v1424_v13, 0.0 }
  0xff   :  { %v2391_v21 = vmax.f32 %v1419_v16, 0.0  ;;  %v2519_v25 = vmax.f32 %v1931_v18, 0.0  ;;  %v2393_v35 = vmax.f32 %v1427_v20, 0.0 }
 0x100   :  { %v2645_v19 = vadd.f32 %v2644_v14, %v2390_v11  ;;  %v2793_v23 = vadd.f32 %v2792_v17, %v2518_v15  ;;  %v2521_v40 = vmax.f32 %v1939_v24, 0.0 }
 0x101   :  { %v3412_v26 = vpop.f32.mrb[20].mxu0  ;;  %v3540_v29 = vpop.f32.mrb[20].mxu1 }
 0x102   :  { %v2646_v28 = vadd.f32 %v2645_v19, %v2391_v21  ;;  %v1431_v30 = vpop.f32.mrb[21].mxu0  ;;  %v2794_v31 = vadd.f32 %v2793_v23, %v2519_v25  ;;  %v1943_v33 = vpop.f32.mrb[21].mxu1  ;;  %v1952_v42 = vadd.f32 %v3540_v29, %v4267_v48  ;;  %v1440_v45 = vadd.f32 %v3412_v26, %v4267_v48 }
 0x103   :  { %v1432_v32 = vadd.f32 %v4267_v48, %v1431_v30  ;;  %v3413_v34 = vpop.f32.mrb[22].mxu0  ;;  %v1944_v37 = vadd.f32 %v4267_v48, %v1943_v33  ;;  %v3541_v38 = vpop.f32.mrb[22].mxu1 }
 0x104   :  { %v2647_v36 = vadd.f32 %v2646_v28, %v2392_v27  ;;  %v1434_v39 = vpop.f32.mrb[23].mxu0  ;;  %v2795_v41 = vadd.f32 %v2794_v31, %v2520_v22  ;;  %v1946_v44 = vpop.f32.mrb[23].mxu1  ;;  %v1443_v53 = vadd.f32 %v3413_v34, %v4267_v48  ;;  %v2524_v55 = vmax.f32 %v1952_v42, 0.0 }
 0x105   :  { %v2394_v43 = vmax.f32 %v1432_v32, 0.0  ;;  %v2522_v47 = vmax.f32 %v1944_v37, 0.0  ;;  %v1435_v49 = vadd.f32 %v4267_v48, %v1434_v39  ;;  %v1947_v51 = vadd.f32 %v4267_v48, %v1946_v44 }
 0x106   :  { %v2648_v46 = vadd.f32 %v2647_v36, %v2393_v35  ;;  %v2796_v50 = vadd.f32 %v2795_v41, %v2521_v40  ;;  %v1955_v57 = vadd.f32 %v3541_v38, %v4267_v48  ;;  %v2396_v60 = vmax.f32 %v1440_v45, 0.0 }
 0x107   :  { %v2395_v54 = vmax.f32 %v1435_v49, 0.0  ;;  %v2523_v58 = vmax.f32 %v1947_v51, 0.0  ;;  %v2397_v4 = vmax.f32 %v1443_v53, 0.0 }
 0x108   :  { %v2649_v52 = vadd.f32 %v2648_v46, %v2394_v43  ;;  %v2797_v56 = vadd.f32 %v2796_v50, %v2522_v47  ;;  %v2525_v9 = vmax.f32 %v1955_v57, 0.0 }
 0x109   :  { %v3416_v59 = vpop.f32.mrb[24].mxu0  ;;  %v3544_v62 = vpop.f32.mrb[24].mxu1 }
 0x10a   :  { %v2650_v61 = vadd.f32 %v2649_v52, %v2395_v54  ;;  %v1447_v63 = vpop.f32.mrb[25].mxu0  ;;  %v2798_v0 = vadd.f32 %v2797_v56, %v2523_v58  ;;  %v1959_v2 = vpop.f32.mrb[25].mxu1  ;;  %v1968_v11 = vadd.f32 %v3544_v62, %v4267_v48  ;;  %v1456_v14 = vadd.f32 %v3416_v59, %v4267_v48 }
 0x10b   :  { %v1448_v1 = vadd.f32 %v4267_v48, %v1447_v63  ;;  %v3417_v3 = vpop.f32.mrb[26].mxu0  ;;  %v1960_v6 = vadd.f32 %v4267_v48, %v1959_v2  ;;  %v3545_v7 = vpop.f32.mrb[26].mxu1 }
 0x10c   :  { %v2651_v5 = vadd.f32 %v2650_v61, %v2396_v60  ;;  %v1450_v8 = vpop.f32.mrb[27].mxu0  ;;  %v2799_v10 = vadd.f32 %v2798_v0, %v2524_v55  ;;  %v1962_v13 = vpop.f32.mrb[27].mxu1  ;;  %v1459_v21 = vadd.f32 %v3417_v3, %v4267_v48  ;;  %v2528_v23 = vmax.f32 %v1968_v11, 0.0 }
 0x10d   :  { %v2398_v12 = vmax.f32 %v1448_v1, 0.0  ;;  %v2526_v16 = vmax.f32 %v1960_v6, 0.0  ;;  %v1451_v17 = vadd.f32 %v4267_v48, %v1450_v8  ;;  %v1963_v19 = vadd.f32 %v4267_v48, %v1962_v13 }
 0x10e   :  { %v2652_v15 = vadd.f32 %v2651_v5, %v2397_v4  ;;  %v2800_v18 = vadd.f32 %v2799_v10, %v2525_v9  ;;  %v1971_v25 = vadd.f32 %v3545_v7, %v4267_v48  ;;  %v2400_v28 = vmax.f32 %v1456_v14, 0.0 }
 0x10f   :  { %v2399_v22 = vmax.f32 %v1451_v17, 0.0  ;;  %v2527_v26 = vmax.f32 %v1963_v19, 0.0  ;;  %v2401_v36 = vmax.f32 %v1459_v21, 0.0 }
 0x110   :  { %v2653_v20 = vadd.f32 %v2652_v15, %v2398_v12  ;;  %v2801_v24 = vadd.f32 %v2800_v18, %v2526_v16  ;;  %v2529_v41 = vmax.f32 %v1971_v25, 0.0 }
 0x111   :  { %v3420_v27 = vpop.f32.mrb[28].mxu0  ;;  %v3548_v30 = vpop.f32.mrb[28].mxu1 }
 0x112   :  { %v2654_v29 = vadd.f32 %v2653_v20, %v2399_v22  ;;  %v1463_v31 = vpop.f32.mrb[29].mxu0  ;;  %v2802_v32 = vadd.f32 %v2801_v24, %v2527_v26  ;;  %v1975_v34 = vpop.f32.mrb[29].mxu1  ;;  %v1984_v43 = vadd.f32 %v3548_v30, %v4267_v48  ;;  %v1472_v46 = vadd.f32 %v3420_v27, %v4267_v48 }
 0x113   :  { %v1464_v33 = vadd.f32 %v4267_v48, %v1463_v31  ;;  %v3421_v35 = vpop.f32.mrb[30].mxu0  ;;  %v1976_v38 = vadd.f32 %v4267_v48, %v1975_v34  ;;  %v3549_v39 = vpop.f32.mrb[30].mxu1 }
 0x114   :  { %v2655_v37 = vadd.f32 %v2654_v29, %v2400_v28  ;;  %v1466_v40 = vpop.f32.mrb[31].mxu0  ;;  %v2803_v42 = vadd.f32 %v2802_v32, %v2528_v23  ;;  %v1978_v45 = vpop.f32.mrb[31].mxu1  ;;  %v1475_v54 = vadd.f32 %v3421_v35, %v4267_v48  ;;  %v2532_v56 = vmax.f32 %v1984_v43, 0.0 }
 0x115   :  { %v2402_v44 = vmax.f32 %v1464_v33, 0.0  ;;  %v2530_v49 = vmax.f32 %v1976_v38, 0.0  ;;  %v1467_v50 = vadd.f32 %v4267_v48, %v1466_v40  ;;  %v1979_v52 = vadd.f32 %v4267_v48, %v1978_v45 }
 0x116   :  { %v2656_v47 = vadd.f32 %v2655_v37, %v2401_v36  ;;  %v2804_v51 = vadd.f32 %v2803_v42, %v2529_v41  ;;  %v1987_v58 = vadd.f32 %v3549_v39, %v4267_v48  ;;  %v2404_v61 = vmax.f32 %v1472_v46, 0.0 }
 0x117   :  { %v2403_v55 = vmax.f32 %v1467_v50, 0.0  ;;  %v2531_v59 = vmax.f32 %v1979_v52, 0.0  ;;  %v2405_v4 = vmax.f32 %v1475_v54, 0.0 }
 0x118   :  { %v2657_v53 = vadd.f32 %v2656_v47, %v2402_v44  ;;  %v2805_v57 = vadd.f32 %v2804_v51, %v2530_v49  ;;  %v2533_v10 = vmax.f32 %v1987_v58, 0.0 }
 0x119   :  { %v3424_v60 = vpop.f32.mrb[32].mxu0  ;;  %v3552_v63 = vpop.f32.mrb[32].mxu1 }
 0x11a   :  { %v2658_v62 = vadd.f32 %v2657_v53, %v2403_v55  ;;  %v1479_v0 = vpop.f32.mrb[33].mxu0  ;;  %v2806_v1 = vadd.f32 %v2805_v57, %v2531_v59  ;;  %v1991_v2 = vpop.f32.mrb[33].mxu1  ;;  %v2000_v12 = vadd.f32 %v3552_v63, %v4267_v48  ;;  %v1488_v15 = vadd.f32 %v3424_v60, %v4267_v48 }
 0x11b   :  { %v3425_v3 = vpop.f32.mrb[34].mxu0  ;;  %v1480_v6 = vadd.f32 %v4267_v48, %v1479_v0  ;;  %v1992_v7 = vadd.f32 %v4267_v48, %v1991_v2  ;;  %v3553_v8 = vpop.f32.mrb[34].mxu1 }
 0x11c   :  { %v2659_v5 = vadd.f32 %v2658_v62, %v2404_v61  ;;  %v1482_v9 = vpop.f32.mrb[35].mxu0  ;;  %v2807_v11 = vadd.f32 %v2806_v1, %v2532_v56  ;;  %v1994_v13 = vpop.f32.mrb[35].mxu1  ;;  %v1491_v21 = vadd.f32 %v3425_v3, %v4267_v48  ;;  %v2536_v23 = vmax.f32 %v2000_v12, 0.0 }
 0x11d   :  { %v1483_v16 = vadd.f32 %v4267_v48, %v1482_v9  ;;  %v2534_v18 = vmax.f32 %v1992_v7, 0.0  ;;  %v1995_v19 = vadd.f32 %v4267_v48, %v1994_v13  ;;  %v2406_v20 = vmax.f32 %v1480_v6, 0.0 }
 0x11e   :  { %v4409_v14 = vadd.f32 %v2659_v5, %v2405_v4  ;;  %v4413_v17 = vadd.f32 %v2807_v11, %v2533_v10  ;;  %v2003_v24 = vadd.f32 %v3553_v8, %v4267_v48  ;;  %v2408_v27 = vmax.f32 %v1488_v15, 0.0 }
 0x11f   :  { %v2407_v22 = vmax.f32 %v1483_v16, 0.0  ;;  %v2535_v25 = vmax.f32 %v1995_v19, 0.0  ;;  %v2409_v35 = vmax.f32 %v1491_v21, 0.0 }
 0x120   :  { %v2537_v40 = vmax.f32 %v2003_v24, 0.0 }
 0x121   :  { %v3428_v26 = vpop.f32.mrb[36].mxu0  ;;  %v2667_v28 = vadd.f32 %v2407_v22, %v2406_v20  ;;  %v3556_v29 = vpop.f32.mrb[36].mxu1  ;;  %v2815_v31 = vadd.f32 %v2535_v25, %v2534_v18 }
 0x122   :  { %v1495_v30 = vpop.f32.mrb[37].mxu0  ;;  %v2007_v33 = vpop.f32.mrb[37].mxu1  ;;  %v2016_v44 = vadd.f32 %v3556_v29, %v4267_v48  ;;  %v1504_v47 = vadd.f32 %v3428_v26, %v4267_v48 }
 0x123   :  { %v1496_v32 = vadd.f32 %v4267_v48, %v1495_v30  ;;  %v3429_v34 = vpop.f32.mrb[38].mxu0  ;;  %v2668_v36 = vadd.f32 %v2667_v28, %v2408_v27  ;;  %v2008_v37 = vadd.f32 %v4267_v48, %v2007_v33  ;;  %v3557_v38 = vpop.f32.mrb[38].mxu1  ;;  %v2816_v41 = vadd.f32 %v2815_v31, %v2536_v23 }
 0x124   :  { %v1498_v39 = vpop.f32.mrb[39].mxu0  ;;  %v2010_v43 = vpop.f32.mrb[39].mxu1  ;;  %v1507_v54 = vadd.f32 %v3429_v34, %v4267_v48  ;;  %v2019_v55 = vadd.f32 %v3557_v38, %v4267_v48  ;;  %v2540_v58 = vmax.f32 %v2016_v44, 0.0  ;;  %v2412_v62 = vmax.f32 %v1504_v47, 0.0 }
 0x125   :  { %v2410_v42 = vmax.f32 %v1496_v32, 0.0  ;;  %v2669_v45 = vadd.f32 %v2668_v36, %v2409_v35  ;;  %v2538_v46 = vmax.f32 %v2008_v37, 0.0  ;;  %v2817_v49 = vadd.f32 %v2816_v41, %v2537_v40 }
 0x126   :  { %v1499_v50 = vadd.f32 %v4267_v48, %v1498_v39  ;;  %v2011_v52 = vadd.f32 %v4267_v48, %v2010_v43  ;;  %v2413_v7 = vmax.f32 %v1507_v54, 0.0  ;;  %v2541_v8 = vmax.f32 %v2019_v55, 0.0 }
 0x127   :  { %v2670_v51 = vadd.f32 %v2669_v45, %v2410_v42  ;;  %v2818_v53 = vadd.f32 %v2817_v49, %v2538_v46 }
 0x128   :  { %v2411_v56 = vmax.f32 %v1499_v50, 0.0  ;;  %v2539_v59 = vmax.f32 %v2011_v52, 0.0 }
 0x129   :  { %v3432_v57 = vpop.f32.mrb[40].mxu0  ;;  %v3560_v60 = vpop.f32.mrb[40].mxu1 }
 0x12a   :  { %v1511_v61 = vpop.f32.mrb[41].mxu0  ;;  %v2671_v63 = vadd.f32 %v2670_v51, %v2411_v56  ;;  %v2023_v1 = vpop.f32.mrb[41].mxu1  ;;  %v2819_v3 = vadd.f32 %v2818_v53, %v2539_v59  ;;  %v2032_v13 = vadd.f32 %v3560_v60, %v4267_v48  ;;  %v1520_v18 = vadd.f32 %v3432_v57, %v4267_v48 }
 0x12b   :  { %v1512_v0 = vadd.f32 %v4267_v48, %v1511_v61  ;;  %v3433_v2 = vpop.f32.mrb[42].mxu0  ;;  %v2024_v4 = vadd.f32 %v4267_v48, %v2023_v1  ;;  %v3561_v5 = vpop.f32.mrb[42].mxu1 }
 0x12c   :  { %v1514_v6 = vpop.f32.mrb[43].mxu0  ;;  %v2672_v9 = vadd.f32 %v2671_v63, %v2412_v62  ;;  %v2026_v11 = vpop.f32.mrb[43].mxu1  ;;  %v2820_v12 = vadd.f32 %v2819_v3, %v2540_v58  ;;  %v1523_v24 = vadd.f32 %v3433_v2, %v4267_v48  ;;  %v2035_v25 = vadd.f32 %v3561_v5, %v4267_v48 }
 0x12d   :  { %v2414_v10 = vmax.f32 %v1512_v0, 0.0  ;;  %v2542_v15 = vmax.f32 %v2024_v4, 0.0  ;;  %v1515_v16 = vadd.f32 %v4267_v48, %v1514_v6  ;;  %v2027_v20 = vadd.f32 %v4267_v48, %v2026_v11 }
 0x12e   :  { %v2673_v19 = vadd.f32 %v2672_v9, %v2413_v7  ;;  %v2821_v21 = vadd.f32 %v2820_v12, %v2541_v8  ;;  %v2544_v28 = vmax.f32 %v2032_v13, 0.0  ;;  %v2416_v32 = vmax.f32 %v1520_v18, 0.0 }
 0x12f   :  { %v2415_v22 = vmax.f32 %v1515_v16, 0.0  ;;  %v2543_v26 = vmax.f32 %v2027_v20, 0.0  ;;  %v2417_v41 = vmax.f32 %v1523_v24, 0.0  ;;  %v2545_v42 = vmax.f32 %v2035_v25, 0.0 }
 0x130   :  { %v2674_v23 = vadd.f32 %v2673_v19, %v2414_v10  ;;  %v2822_v29 = vadd.f32 %v2821_v21, %v2542_v15 }
 0x131   :  { %v3436_v27 = vpop.f32.mrb[44].mxu0  ;;  %v3564_v30 = vpop.f32.mrb[44].mxu1 }
 0x132   :  { %v1527_v31 = vpop.f32.mrb[45].mxu0  ;;  %v2675_v33 = vadd.f32 %v2674_v23, %v2415_v22  ;;  %v2039_v35 = vpop.f32.mrb[45].mxu1  ;;  %v2823_v37 = vadd.f32 %v2822_v29, %v2543_v26  ;;  %v2048_v47 = vadd.f32 %v3564_v30, %v4267_v48  ;;  %v1536_v51 = vadd.f32 %v3436_v27, %v4267_v48 }
 0x133   :  { %v1528_v34 = vadd.f32 %v4267_v48, %v1527_v31  ;;  %v3437_v36 = vpop.f32.mrb[46].mxu0  ;;  %v2040_v38 = vadd.f32 %v4267_v48, %v2039_v35  ;;  %v3565_v39 = vpop.f32.mrb[46].mxu1 }
 0x134   :  { %v1530_v40 = vpop.f32.mrb[47].mxu0  ;;  %v2676_v43 = vadd.f32 %v2675_v33, %v2416_v32  ;;  %v2042_v45 = vpop.f32.mrb[47].mxu1  ;;  %v2824_v46 = vadd.f32 %v2823_v37, %v2544_v28  ;;  %v1539_v57 = vadd.f32 %v3437_v36, %v4267_v48  ;;  %v2051_v58 = vadd.f32 %v3565_v39, %v4267_v48 }
 0x135   :  { %v2418_v44 = vmax.f32 %v1528_v34, 0.0  ;;  %v2546_v49 = vmax.f32 %v2040_v38, 0.0  ;;  %v1531_v50 = vadd.f32 %v4267_v48, %v1530_v40  ;;  %v2043_v53 = vadd.f32 %v4267_v48, %v2042_v45 }
 0x136   :  { %v2677_v52 = vadd.f32 %v2676_v43, %v2417_v41  ;;  %v2825_v54 = vadd.f32 %v2824_v46, %v2545_v42  ;;  %v2548_v61 = vmax.f32 %v2048_v47, 0.0  ;;  %v2420_v1 = vmax.f32 %v1536_v51, 0.0 }
 0x137   :  { %v2419_v55 = vmax.f32 %v1531_v50, 0.0  ;;  %v2547_v59 = vmax.f32 %v2043_v53, 0.0  ;;  %v2421_v10 = vmax.f32 %v1539_v57, 0.0  ;;  %v2549_v11 = vmax.f32 %v2051_v58, 0.0 }
 0x138   :  { %v2678_v56 = vadd.f32 %v2677_v52, %v2418_v44  ;;  %v2826_v62 = vadd.f32 %v2825_v54, %v2546_v49 }
 0x139   :  { %v3440_v60 = vpop.f32.mrb[48].mxu0  ;;  %v3568_v63 = vpop.f32.mrb[48].mxu1 }
 0x13a   :  { %v1543_v0 = vpop.f32.mrb[49].mxu0  ;;  %v2679_v2 = vadd.f32 %v2678_v56, %v2419_v55  ;;  %v2055_v4 = vpop.f32.mrb[49].mxu1  ;;  %v2827_v6 = vadd.f32 %v2826_v62, %v2547_v59  ;;  %v2064_v18 = vadd.f32 %v3568_v63, %v4267_v48  ;;  %v1552_v21 = vadd.f32 %v3440_v60, %v4267_v48 }
 0x13b   :  { %v1544_v3 = vadd.f32 %v4267_v48, %v1543_v0  ;;  %v3441_v5 = vpop.f32.mrb[50].mxu0  ;;  %v2056_v7 = vadd.f32 %v4267_v48, %v2055_v4  ;;  %v3569_v8 = vpop.f32.mrb[50].mxu1 }
 0x13c   :  { %v1546_v9 = vpop.f32.mrb[51].mxu0  ;;  %v2680_v12 = vadd.f32 %v2679_v2, %v2420_v1  ;;  %v2058_v15 = vpop.f32.mrb[51].mxu1  ;;  %v2828_v16 = vadd.f32 %v2827_v6, %v2548_v61  ;;  %v1555_v27 = vadd.f32 %v3441_v5, %v4267_v48  ;;  %v2067_v28 = vadd.f32 %v3569_v8, %v4267_v48 }
 0x13d   :  { %v2422_v13 = vmax.f32 %v1544_v3, 0.0  ;;  %v2550_v19 = vmax.f32 %v2056_v7, 0.0  ;;  %v1547_v20 = vadd.f32 %v4267_v48, %v1546_v9  ;;  %v2059_v23 = vadd.f32 %v4267_v48, %v2058_v15 }
 0x13e   :  { %v2681_v22 = vadd.f32 %v2680_v12, %v2421_v10  ;;  %v2829_v24 = vadd.f32 %v2828_v16, %v2549_v11  ;;  %v2552_v31 = vmax.f32 %v2064_v18, 0.0  ;;  %v2424_v35 = vmax.f32 %v1552_v21, 0.0 }
 0x13f   :  { %v2423_v25 = vmax.f32 %v1547_v20, 0.0  ;;  %v2551_v29 = vmax.f32 %v2059_v23, 0.0  ;;  %v2425_v44 = vmax.f32 %v1555_v27, 0.0  ;;  %v2553_v45 = vmax.f32 %v2067_v28, 0.0 }
 0x140   :  { %v2682_v26 = vadd.f32 %v2681_v22, %v2422_v13  ;;  %v2830_v32 = vadd.f32 %v2829_v24, %v2550_v19 }
 0x141   :  { %v3444_v30 = vpop.f32.mrb[52].mxu0  ;;  %v3572_v33 = vpop.f32.mrb[52].mxu1 }
 0x142   :  { %v1559_v34 = vpop.f32.mrb[53].mxu0  ;;  %v2683_v36 = vadd.f32 %v2682_v26, %v2423_v25  ;;  %v2071_v38 = vpop.f32.mrb[53].mxu1  ;;  %v2831_v40 = vadd.f32 %v2830_v32, %v2551_v29  ;;  %v2080_v51 = vadd.f32 %v3572_v33, %v4267_v48  ;;  %v1568_v54 = vadd.f32 %v3444_v30, %v4267_v48 }
 0x143   :  { %v1560_v37 = vadd.f32 %v4267_v48, %v1559_v34  ;;  %v3445_v39 = vpop.f32.mrb[54].mxu0  ;;  %v2072_v41 = vadd.f32 %v4267_v48, %v2071_v38  ;;  %v3573_v42 = vpop.f32.mrb[54].mxu1  ;;  %v2661_v38 = vrot.slane %v4409_v14, 4 }
 0x144   :  { %v1562_v43 = vpop.f32.mrb[55].mxu0  ;;  %v2684_v46 = vadd.f32 %v2683_v36, %v2424_v35  ;;  %v2074_v49 = vpop.f32.mrb[55].mxu1  ;;  %v2832_v50 = vadd.f32 %v2831_v40, %v2552_v31  ;;  %v1571_v60 = vadd.f32 %v3445_v39, %v4267_v48  ;;  %v2083_v61 = vadd.f32 %v3573_v42, %v4267_v48 }
 0x145   :  { %v2426_v47 = vmax.f32 %v1560_v37, 0.0  ;;  %v2554_v52 = vmax.f32 %v2072_v41, 0.0  ;;  %v1563_v53 = vadd.f32 %v4267_v48, %v1562_v43  ;;  %v2075_v56 = vadd.f32 %v4267_v48, %v2074_v49 }
 0x146   :  { %v2685_v55 = vadd.f32 %v2684_v46, %v2425_v44  ;;  %v2833_v57 = vadd.f32 %v2832_v50, %v2553_v45  ;;  %v2556_v0 = vmax.f32 %v2080_v51, 0.0  ;;  %v2428_v4 = vmax.f32 %v1568_v54, 0.0  ;;  %v4471_v45 = vld [vmem:[%s4642_s2] ss:$0 sm:$0xff] }
 0x147   :  { %v2427_v58 = vmax.f32 %v1563_v53, 0.0  ;;  %v2555_v62 = vmax.f32 %v2075_v56, 0.0  ;;  %v2429_v13 = vmax.f32 %v1571_v60, 0.0  ;;  %v2557_v15 = vmax.f32 %v2083_v61, 0.0 }
 0x148   :  { %v2686_v59 = vadd.f32 %v2685_v55, %v2426_v47  ;;  %v2834_v1 = vadd.f32 %v2833_v57, %v2554_v52 }
 0x149   :  { %v3448_v63 = vpop.f32.mrb[56].mxu0  ;;  %v3576_v2 = vpop.f32.mrb[56].mxu1 }
 0x14a   :  { %v1575_v3 = vpop.f32.mrb[57].mxu0  ;;  %v2687_v5 = vadd.f32 %v2686_v59, %v2427_v58  ;;  %v2087_v7 = vpop.f32.mrb[57].mxu1  ;;  %v2835_v9 = vadd.f32 %v2834_v1, %v2555_v62  ;;  %v2096_v21 = vadd.f32 %v3576_v2, %v4267_v48  ;;  %v1584_v24 = vadd.f32 %v3448_v63, %v4267_v48 }
 0x14b   :  { %v1576_v6 = vadd.f32 %v4267_v48, %v1575_v3  ;;  %v3449_v8 = vpop.f32.mrb[58].mxu0  ;;  %v2088_v10 = vadd.f32 %v4267_v48, %v2087_v7  ;;  %v3577_v11 = vpop.f32.mrb[58].mxu1  ;;  %v2662_v58 = vadd.f32 %v2661_v38, %v4409_v14 }
 0x14c   :  { %v1578_v12 = vpop.f32.mrb[59].mxu0  ;;  %v2688_v16 = vadd.f32 %v2687_v5, %v2428_v4  ;;  %v2090_v19 = vpop.f32.mrb[59].mxu1  ;;  %v2836_v20 = vadd.f32 %v2835_v9, %v2556_v0  ;;  %v1587_v30 = vadd.f32 %v3449_v8, %v4267_v48  ;;  %v2099_v31 = vadd.f32 %v3577_v11, %v4267_v48 }
 0x14d   :  { %v2430_v18 = vmax.f32 %v1576_v6, 0.0  ;;  %v2558_v22 = vmax.f32 %v2088_v10, 0.0  ;;  %v1579_v23 = vadd.f32 %v4267_v48, %v1578_v12  ;;  %v2091_v26 = vadd.f32 %v4267_v48, %v2090_v19 }
 0x14e   :  { %v2689_v25 = vadd.f32 %v2688_v16, %v2429_v13  ;;  %v2837_v27 = vadd.f32 %v2836_v20, %v2557_v15  ;;  %v2560_v34 = vmax.f32 %v2096_v21, 0.0  ;;  %v2432_v39 = vmax.f32 %v1584_v24, 0.0 }
 0x14f   :  { %v2431_v28 = vmax.f32 %v1579_v23, 0.0  ;;  %v2559_v32 = vmax.f32 %v2091_v26, 0.0  ;;  %v2433_v50 = vmax.f32 %v1587_v30, 0.0  ;;  %v2561_v51 = vmax.f32 %v2099_v31, 0.0 }
 0x150   :  { %v2690_v29 = vadd.f32 %v2689_v25, %v2430_v18  ;;  %v2838_v35 = vadd.f32 %v2837_v27, %v2558_v22  ;;  %v2663_v9 = vrot.slane %v2662_v58, 2 }
 0x151   :  { %v3452_v33 = vpop.f32.mrb[60].mxu0  ;;  %v3580_v36 = vpop.f32.mrb[60].mxu1 }
 0x152   :  { %v1591_v37 = vpop.f32.mrb[61].mxu0  ;;  %v2691_v40 = vadd.f32 %v2690_v29, %v2431_v28  ;;  %v2103_v42 = vpop.f32.mrb[61].mxu1  ;;  %v2839_v44 = vadd.f32 %v2838_v35, %v2559_v32  ;;  %v1600_v59 = vadd.f32 %v4471_v45, %v3452_v33  ;;  %v2664_v28 = vadd.f32 %v2663_v9, %v2662_v58  ;;  %v4501_v9 = vld [vmem:[%s4643_s3] ss:$0 sm:$0xff] }
 0x153   :  { %v1592_v41 = vadd.f32 %v4267_v48, %v1591_v37  ;;  %v3453_v43 = vpop.f32.mrb[62].mxu0  ;;  %v2104_v46 = vadd.f32 %v4471_v45, %v2103_v42  ;;  %v3581_v47 = vpop.f32.mrb[62].mxu1  ;;  %v2112_v48 = vadd.f32 %v4471_v45, %v3580_v36 }
 0x154   :  { %v1594_v49 = vpop.f32.mrb[63].mxu0  ;;  %v2692_v52 = vadd.f32 %v2691_v40, %v2432_v39  ;;  %v2106_v54 = vpop.f32.mrb[63].mxu1  ;;  %v2840_v55 = vadd.f32 %v2839_v44, %v2560_v34  ;;  %v1603_v1 = vadd.f32 %v4471_v45, %v3453_v43  ;;  %v2115_v6 = vadd.f32 %v4471_v45, %v3581_v47 }
 0x155   :  { %v2434_v53 = vmax.f32 %v1592_v41, 0.0  ;;  %v2562_v56 = vmax.f32 %v2104_v46, 0.0  ;;  %v1595_v57 = vadd.f32 %v4471_v45, %v1594_v49  ;;  %v2107_v61 = vadd.f32 %v4471_v45, %v2106_v54 }
 0x156   :  { %v2693_v60 = vadd.f32 %v2692_v52, %v2433_v50  ;;  %v2841_v62 = vadd.f32 %v2840_v55, %v2561_v51  ;;  %v2564_v4 = vmax.f32 %v2112_v48, 0.0  ;;  %v2436_v14 = vmax.f32 %v1600_v59, 0.0 }
 0x157   :  { %v2435_v63 = vmax.f32 %v1595_v57, 0.0  ;;  %v2563_v2 = vmax.f32 %v2107_v61, 0.0  ;;  %v2437_v20 = vmax.f32 %v1603_v1, 0.0  ;;  %v2565_v24 = vmax.f32 %v2115_v6, 0.0 }
 0x158   :  { %v2694_v0 = vadd.f32 %v2693_v60, %v2434_v53  ;;  %v2842_v5 = vadd.f32 %v2841_v62, %v2562_v56  ;;  %v2665_v52 = vrot.slane %v2664_v28, 1 }
 0x159   :  { %v3456_v3 = vpop.f32.mrb[64].mxu0  ;;  %v3584_v7 = vpop.f32.mrb[64].mxu1 }
 0x15a   :  { %v1607_v8 = vpop.f32.mrb[65].mxu0  ;;  %v2695_v10 = vadd.f32 %v2694_v0, %v2435_v63  ;;  %v2119_v11 = vpop.f32.mrb[65].mxu1  ;;  %v2843_v13 = vadd.f32 %v2842_v5, %v2563_v2  ;;  %v2128_v22 = vadd.f32 %v4471_v45, %v3584_v7  ;;  %v1616_v26 = vadd.f32 %v4471_v45, %v3456_v3 }
 0x15b   :  { %v3457_v12 = vpop.f32.mrb[66].mxu0  ;;  %v1608_v15 = vadd.f32 %v4471_v45, %v1607_v8  ;;  %v2120_v16 = vadd.f32 %v4471_v45, %v2119_v11  ;;  %v3585_v18 = vpop.f32.mrb[66].mxu1  ;;  %v2666_v5 = vadd.f32 %v2665_v52, %v2664_v28 }
 0x15c   :  { %v1610_v19 = vpop.f32.mrb[67].mxu0  ;;  %v2696_v21 = vadd.f32 %v2695_v10, %v2436_v14  ;;  %v2122_v23 = vpop.f32.mrb[67].mxu1  ;;  %v2844_v25 = vadd.f32 %v2843_v13, %v2564_v4  ;;  %v1619_v34 = vadd.f32 %v4471_v45, %v3457_v12  ;;  %v2568_v37 = vmax.f32 %v2128_v22, 0.0 }
 0x15d   :  { %v1611_v27 = vadd.f32 %v4471_v45, %v1610_v19  ;;  %v2566_v30 = vmax.f32 %v2120_v16, 0.0  ;;  %v2123_v31 = vadd.f32 %v4471_v45, %v2122_v23  ;;  %v2438_v33 = vmax.f32 %v1608_v15, 0.0 }
 0x15e   :  { %v2697_v29 = vadd.f32 %v2696_v21, %v2437_v20  ;;  %v4487_v32 = vadd.f32 %v2844_v25, %v2565_v24  ;;  %v2131_v38 = vadd.f32 %v4471_v45, %v3585_v18  ;;  %v2440_v41 = vmax.f32 %v1616_v26, 0.0 }
 0x15f   :  { %v2439_v35 = vmax.f32 %v1611_v27, 0.0  ;;  %v2567_v39 = vmax.f32 %v2123_v31, 0.0  ;;  %v2441_v53 = vmax.f32 %v1619_v34, 0.0  ;;  %v2933_v26 = vmul.f32 %v4501_v9, %v2666_v5 }
 0x160   :  { %v2698_v36 = vrot.slane %v2697_v29, 4  ;;  %v2569_v58 = vmax.f32 %v2131_v38, 0.0 }
 0x161   :  { %v3460_v40 = vpop.f32.mrb[68].mxu0  ;;  %v2704_v42 = vadd.f32 %v2439_v35, %v2438_v33  ;;  %v3588_v43 = vpop.f32.mrb[68].mxu1  ;;  %v2852_v47 = vadd.f32 %v2567_v39, %v2566_v30 }
 0x162   :  { %v1623_v44 = vpop.f32.mrb[69].mxu0  ;;  %v2699_v46 = vadd.f32 %v2698_v36, %v2697_v29  ;;  %v2135_v50 = vpop.f32.mrb[69].mxu1  ;;  %v2144_v62 = vadd.f32 %v4471_v45, %v3588_v43  ;;  %v1632_v2 = vadd.f32 %v4471_v45, %v3460_v40 }
 0x163   :  { %v1624_v49 = vadd.f32 %v4471_v45, %v1623_v44  ;;  %v3461_v51 = vpop.f32.mrb[70].mxu0  ;;  %v2705_v54 = vadd.f32 %v2704_v42, %v2440_v41  ;;  %v2136_v55 = vadd.f32 %v4471_v45, %v2135_v50  ;;  %v3589_v48 = vpop.f32.mrb[70].mxu1  ;;  %v2853_v59 = vadd.f32 %v2852_v47, %v2568_v37 }
 0x164   :  { %v1626_v56 = vpop.f32.mrb[71].mxu0  ;;  %v2700_v57 = vrot.slane %v2699_v46, 2  ;;  %v2138_v61 = vpop.f32.mrb[71].mxu1  ;;  %v1635_v7 = vadd.f32 %v4471_v45, %v3461_v51  ;;  %v2147_v11 = vadd.f32 %v4471_v45, %v3589_v48  ;;  %v2572_v15 = vmax.f32 %v2144_v62, 0.0 }
 0x165   :  { %v2442_v60 = vmax.f32 %v1624_v49, 0.0  ;;  %v2706_v63 = vadd.f32 %v2705_v54, %v2441_v53  ;;  %v2570_v0 = vmax.f32 %v2136_v55, 0.0  ;;  %v2854_v3 = vadd.f32 %v2853_v59, %v2569_v58 }
 0x166   :  { %v2701_v1 = vadd.f32 %v2700_v57, %v2699_v46  ;;  %v1627_v4 = vadd.f32 %v4471_v45, %v1626_v56  ;;  %v2139_v8 = vadd.f32 %v4471_v45, %v2138_v61  ;;  %v2444_v21 = vmax.f32 %v1632_v2, 0.0 }
 0x167   :  { %v2707_v6 = vadd.f32 %v2706_v63, %v2442_v60  ;;  %v2855_v10 = vadd.f32 %v2854_v3, %v2570_v0  ;;  %v2445_v27 = vmax.f32 %v1635_v7, 0.0  ;;  %v2573_v34 = vmax.f32 %v2147_v11, 0.0 }
 0x168   :  { %v2702_v14 = vrot.slane %v2701_v1, 1  ;;  %v2443_v12 = vmax.f32 %v1627_v4, 0.0  ;;  %v2571_v16 = vmax.f32 %v2139_v8, 0.0 }
 0x169   :  { %v3464_v13 = vpop.f32.mrb[72].mxu0  ;;  %v3592_v18 = vpop.f32.mrb[72].mxu1 }
 0x16a   :  { %v1639_v19 = vpop.f32.mrb[73].mxu0  ;;  %v2703_v20 = vadd.f32 %v2702_v14, %v2701_v1  ;;  %v2708_v22 = vadd.f32 %v2707_v6, %v2443_v12  ;;  %v2151_v24 = vpop.f32.mrb[73].mxu1  ;;  %v2856_v28 = vadd.f32 %v2855_v10, %v2571_v16  ;;  %v1648_v39 = vadd.f32 %v4471_v45, %v3464_v13 }
 0x16b   :  { %v1640_v23 = vadd.f32 %v4471_v45, %v1639_v19  ;;  %v3465_v25 = vpop.f32.mrb[74].mxu0  ;;  %v2152_v29 = vadd.f32 %v4471_v45, %v2151_v24  ;;  %v3593_v30 = vpop.f32.mrb[74].mxu1  ;;  %v2160_v40 = vadd.f32 %v4471_v45, %v3592_v18 }
 0x16c   :  { %v1642_v31 = vpop.f32.mrb[75].mxu0  ;;  %v2934_v33 = vmul.f32 %v4501_v9, %v2703_v20  ;;  %v2709_v35 = vadd.f32 %v2708_v22, %v2444_v21  ;;  %v2154_v37 = vpop.f32.mrb[75].mxu1  ;;  %v2857_v38 = vadd.f32 %v2856_v28, %v2572_v15  ;;  %v1651_v49 = vadd.f32 %v4471_v45, %v3465_v25 }
 0x16d   :  { %v2446_v36 = vmax.f32 %v1640_v23, 0.0  ;;  %v2574_v41 = vmax.f32 %v2152_v29, 0.0  ;;  %v1643_v44 = vadd.f32 %v4471_v45, %v1642_v31  ;;  %v2155_v46 = vadd.f32 %v4471_v45, %v2154_v37 }
 0x16e   :  { %v2949_v42 = vrot.slane %v2934_v33, 7  ;;  %v2710_v43 = vadd.f32 %v2709_v35, %v2445_v27  ;;  %v2858_v47 = vadd.f32 %v2857_v38, %v2573_v34  ;;  %v2163_v50 = vadd.f32 %v4471_v45, %v3593_v30 }
 0x16f   :  { %v2447_v52 = vmax.f32 %v1643_v44, 0.0  ;;  %v2575_v53 = vmax.f32 %v2155_v46, 0.0  ;;  %v2576_v48 = vmax.f32 %v2160_v40, 0.0  ;;  %v2448_v59 = vmax.f32 %v1648_v39, 0.0 }
 0x170   :  { %v2711_v51 = vadd.f32 %v2710_v43, %v2446_v36  ;;  %v4515_v55 = vsel %vm2950_vm2, %v2949_v42, %v2933_v26  ;;  %v2859_v56 = vadd.f32 %v2858_v47, %v2574_v41  ;;  %v2449_v4 = vmax.f32 %v1651_v49, 0.0 }
 0x171   :  { %v3468_v54 = vpop.f32.mrb[76].mxu0  ;;  %v3596_v57 = vpop.f32.mrb[76].mxu1  ;;  %v2577_v5 = vmax.f32 %v2163_v50, 0.0 }
 0x172   :  { %v1655_v58 = vpop.f32.mrb[77].mxu0  ;;  %v2712_v60 = vadd.f32 %v2711_v51, %v2447_v52  ;;  %v2167_v62 = vpop.f32.mrb[77].mxu1  ;;  %v2860_v0 = vadd.f32 %v2859_v56, %v2575_v53  ;;  %v2176_v10 = vadd.f32 %v4471_v45, %v3596_v57  ;;  %v1664_v13 = vadd.f32 %v4471_v45, %v3468_v54 }
 0x173   :  { %v1656_v61 = vadd.f32 %v4471_v45, %v1655_v58  ;;  %v3469_v63 = vpop.f32.mrb[78].mxu0  ;;  %v2168_v1 = vadd.f32 %v4471_v45, %v2167_v62  ;;  %v3597_v2 = vpop.f32.mrb[78].mxu1 }
 0x174   :  { %v1658_v3 = vpop.f32.mrb[79].mxu0  ;;  %v2713_v6 = vadd.f32 %v2712_v60, %v2448_v59  ;;  %v2170_v8 = vpop.f32.mrb[79].mxu1  ;;  %v2861_v14 = vadd.f32 %v2860_v0, %v2576_v48  ;;  %v1667_v21 = vadd.f32 %v4471_v45, %v3469_v63  ;;  %v2179_v22 = vadd.f32 %v4471_v45, %v3597_v2 }
 0x175   :  { %v2450_v7 = vmax.f32 %v1656_v61, 0.0  ;;  %v2578_v11 = vmax.f32 %v2168_v1, 0.0  ;;  %v1659_v12 = vadd.f32 %v4471_v45, %v1658_v3  ;;  %v2171_v16 = vadd.f32 %v4471_v45, %v2170_v8 }
 0x176   :  { %v2714_v15 = vadd.f32 %v2713_v6, %v2449_v4  ;;  %v2862_v18 = vadd.f32 %v2861_v14, %v2577_v5  ;;  %v2580_v25 = vmax.f32 %v2176_v10, 0.0  ;;  %v2452_v29 = vmax.f32 %v1664_v13, 0.0 }
 0x177   :  { %v2451_v19 = vmax.f32 %v1659_v12, 0.0  ;;  %v2579_v23 = vmax.f32 %v2171_v16, 0.0  ;;  %v2453_v39 = vmax.f32 %v1667_v21, 0.0  ;;  %v2581_v40 = vmax.f32 %v2179_v22, 0.0 }
 0x178   :  { %v2715_v20 = vadd.f32 %v2714_v15, %v2450_v7  ;;  %v2863_v26 = vadd.f32 %v2862_v18, %v2578_v11 }
 0x179   :  { %v3472_v24 = vpop.f32.mrb[80].mxu0  ;;  %v3600_v27 = vpop.f32.mrb[80].mxu1 }
 0x17a   :  { %v1671_v28 = vpop.f32.mrb[81].mxu0  ;;  %v2716_v30 = vadd.f32 %v2715_v20, %v2451_v19  ;;  %v2183_v33 = vpop.f32.mrb[81].mxu1  ;;  %v2864_v35 = vadd.f32 %v2863_v26, %v2579_v23  ;;  %v2192_v46 = vadd.f32 %v4471_v45, %v3600_v27  ;;  %v1680_v50 = vadd.f32 %v4471_v45, %v3472_v24 }
 0x17b   :  { %v1672_v31 = vadd.f32 %v4471_v45, %v1671_v28  ;;  %v3473_v34 = vpop.f32.mrb[82].mxu0  ;;  %v2184_v36 = vadd.f32 %v4471_v45, %v2183_v33  ;;  %v3601_v37 = vpop.f32.mrb[82].mxu1 }
 0x17c   :  { %v1674_v38 = vpop.f32.mrb[83].mxu0  ;;  %v2717_v41 = vadd.f32 %v2716_v30, %v2452_v29  ;;  %v2186_v43 = vpop.f32.mrb[83].mxu1  ;;  %v2865_v44 = vadd.f32 %v2864_v35, %v2580_v25  ;;  %v1683_v56 = vadd.f32 %v4471_v45, %v3473_v34  ;;  %v2195_v57 = vadd.f32 %v4471_v45, %v3601_v37 }
 0x17d   :  { %v2454_v42 = vmax.f32 %v1672_v31, 0.0  ;;  %v2582_v47 = vmax.f32 %v2184_v36, 0.0  ;;  %v1675_v49 = vadd.f32 %v4471_v45, %v1674_v38  ;;  %v2187_v52 = vadd.f32 %v4471_v45, %v2186_v43 }
 0x17e   :  { %v2718_v51 = vadd.f32 %v2717_v41, %v2453_v39  ;;  %v2866_v53 = vadd.f32 %v2865_v44, %v2581_v40  ;;  %v2584_v60 = vmax.f32 %v2192_v46, 0.0  ;;  %v2456_v0 = vmax.f32 %v1680_v50, 0.0 }
 0x17f   :  { %v2455_v54 = vmax.f32 %v1675_v49, 0.0  ;;  %v2583_v58 = vmax.f32 %v2187_v52, 0.0  ;;  %v2457_v14 = vmax.f32 %v1683_v56, 0.0  ;;  %v2585_v10 = vmax.f32 %v2195_v57, 0.0 }
 0x180   :  { %v2719_v48 = vadd.f32 %v2718_v51, %v2454_v42  ;;  %v2867_v61 = vadd.f32 %v2866_v53, %v2582_v47 }
 0x181   :  { %v3476_v59 = vpop.f32.mrb[84].mxu0  ;;  %v3604_v62 = vpop.f32.mrb[84].mxu1 }
 0x182   :  { %v1687_v63 = vpop.f32.mrb[85].mxu0  ;;  %v2720_v1 = vadd.f32 %v2719_v48, %v2455_v54  ;;  %v2199_v3 = vpop.f32.mrb[85].mxu1  ;;  %v2868_v5 = vadd.f32 %v2867_v61, %v2583_v58  ;;  %v2208_v16 = vadd.f32 %v4471_v45, %v3604_v62  ;;  %v1696_v20 = vadd.f32 %v4471_v45, %v3476_v59 }
 0x183   :  { %v1688_v2 = vadd.f32 %v4471_v45, %v1687_v63  ;;  %v3477_v4 = vpop.f32.mrb[86].mxu0  ;;  %v2200_v6 = vadd.f32 %v4471_v45, %v2199_v3  ;;  %v3605_v7 = vpop.f32.mrb[86].mxu1 }
 0x184   :  { %v1690_v8 = vpop.f32.mrb[87].mxu0  ;;  %v2721_v11 = vadd.f32 %v2720_v1, %v2456_v0  ;;  %v2202_v13 = vpop.f32.mrb[87].mxu1  ;;  %v2869_v15 = vadd.f32 %v2868_v5, %v2584_v60  ;;  %v1699_v26 = vadd.f32 %v4471_v45, %v3477_v4  ;;  %v2211_v27 = vadd.f32 %v4471_v45, %v3605_v7 }
 0x185   :  { %v2458_v12 = vmax.f32 %v1688_v2, 0.0  ;;  %v2586_v18 = vmax.f32 %v2200_v6, 0.0  ;;  %v1691_v19 = vadd.f32 %v4471_v45, %v1690_v8  ;;  %v2203_v22 = vadd.f32 %v4471_v45, %v2202_v13 }
 0x186   :  { %v2722_v21 = vadd.f32 %v2721_v11, %v2457_v14  ;;  %v2870_v23 = vadd.f32 %v2869_v15, %v2585_v10  ;;  %v2588_v30 = vmax.f32 %v2208_v16, 0.0  ;;  %v2460_v35 = vmax.f32 %v1696_v20, 0.0 }
 0x187   :  { %v2459_v24 = vmax.f32 %v1691_v19, 0.0  ;;  %v2587_v28 = vmax.f32 %v2203_v22, 0.0  ;;  %v2461_v44 = vmax.f32 %v1699_v26, 0.0  ;;  %v2589_v46 = vmax.f32 %v2211_v27, 0.0 }
 0x188   :  { %v2723_v25 = vadd.f32 %v2722_v21, %v2458_v12  ;;  %v2871_v31 = vadd.f32 %v2870_v23, %v2586_v18 }
 0x189   :  { %v3480_v29 = vpop.f32.mrb[88].mxu0  ;;  %v3608_v33 = vpop.f32.mrb[88].mxu1 }
 0x18a   :  { %v1703_v34 = vpop.f32.mrb[89].mxu0  ;;  %v2724_v36 = vadd.f32 %v2723_v25, %v2459_v24  ;;  %v2215_v38 = vpop.f32.mrb[89].mxu1  ;;  %v2872_v40 = vadd.f32 %v2871_v31, %v2587_v28  ;;  %v2224_v52 = vadd.f32 %v4471_v45, %v3608_v33  ;;  %v1712_v48 = vadd.f32 %v4471_v45, %v3480_v29 }
 0x18b   :  { %v1704_v37 = vadd.f32 %v4471_v45, %v1703_v34  ;;  %v3481_v39 = vpop.f32.mrb[90].mxu0  ;;  %v2216_v41 = vadd.f32 %v4471_v45, %v2215_v38  ;;  %v3609_v42 = vpop.f32.mrb[90].mxu1 }
 0x18c   :  { %v1706_v43 = vpop.f32.mrb[91].mxu0  ;;  %v2725_v47 = vadd.f32 %v2724_v36, %v2460_v35  ;;  %v2218_v50 = vpop.f32.mrb[91].mxu1  ;;  %v2873_v51 = vadd.f32 %v2872_v40, %v2588_v30  ;;  %v1715_v61 = vadd.f32 %v4471_v45, %v3481_v39  ;;  %v2227_v62 = vadd.f32 %v4471_v45, %v3609_v42 }
 0x18d   :  { %v2462_v49 = vmax.f32 %v1704_v37, 0.0  ;;  %v2590_v53 = vmax.f32 %v2216_v41, 0.0  ;;  %v1707_v54 = vadd.f32 %v4471_v45, %v1706_v43  ;;  %v2219_v57 = vadd.f32 %v4471_v45, %v2218_v50 }
 0x18e   :  { %v2726_v56 = vadd.f32 %v2725_v47, %v2461_v44  ;;  %v2874_v58 = vadd.f32 %v2873_v51, %v2589_v46  ;;  %v2592_v1 = vmax.f32 %v2224_v52, 0.0  ;;  %v2464_v5 = vmax.f32 %v1712_v48, 0.0 }
 0x18f   :  { %v2463_v59 = vmax.f32 %v1707_v54, 0.0  ;;  %v2591_v63 = vmax.f32 %v2219_v57, 0.0  ;;  %v2465_v15 = vmax.f32 %v1715_v61, 0.0  ;;  %v2593_v16 = vmax.f32 %v2227_v62, 0.0 }
 0x190   :  { %v2727_v60 = vadd.f32 %v2726_v56, %v2462_v49  ;;  %v2875_v2 = vadd.f32 %v2874_v58, %v2590_v53 }
 0x191   :  { %v3484_v0 = vpop.f32.mrb[92].mxu0  ;;  %v3612_v3 = vpop.f32.mrb[92].mxu1 }
 0x192   :  { %v1719_v4 = vpop.f32.mrb[93].mxu0  ;;  %v2728_v6 = vadd.f32 %v2727_v60, %v2463_v59  ;;  %v2231_v8 = vpop.f32.mrb[93].mxu1  ;;  %v2876_v10 = vadd.f32 %v2875_v2, %v2591_v63  ;;  %v2240_v22 = vadd.f32 %v4471_v45, %v3612_v3  ;;  %v1728_v25 = vadd.f32 %v4471_v45, %v3484_v0 }
 0x193   :  { %v1720_v7 = vadd.f32 %v4471_v45, %v1719_v4  ;;  %v3485_v14 = vpop.f32.mrb[94].mxu0  ;;  %v2232_v11 = vadd.f32 %v4471_v45, %v2231_v8  ;;  %v3613_v12 = vpop.f32.mrb[94].mxu1 }
 0x194   :  { %v1722_v13 = vpop.f32.mrb[95].mxu0  ;;  %v2729_v18 = vadd.f32 %v2728_v6, %v2464_v5  ;;  %v2234_v20 = vpop.f32.mrb[95].mxu1  ;;  %v2877_v21 = vadd.f32 %v2876_v10, %v2592_v1  ;;  %v1731_v31 = vadd.f32 %v4471_v45, %v3485_v14  ;;  %v2596_v35 = vmax.f32 %v2240_v22, 0.0 }
 0x195   :  { %v2466_v19 = vmax.f32 %v1720_v7, 0.0  ;;  %v2594_v23 = vmax.f32 %v2232_v11, 0.0  ;;  %v1723_v24 = vadd.f32 %v4471_v45, %v1722_v13  ;;  %v2235_v27 = vadd.f32 %v4471_v45, %v2234_v20 }
 0x196   :  { %v2730_v26 = vadd.f32 %v2729_v18, %v2465_v15  ;;  %v2878_v28 = vadd.f32 %v2877_v21, %v2593_v16  ;;  %v2243_v37 = vadd.f32 %v4471_v45, %v3613_v12  ;;  %v2468_v40 = vmax.f32 %v1728_v25, 0.0 }
 0x197   :  { %v2467_v29 = vmax.f32 %v1723_v24, 0.0  ;;  %v2595_v33 = vmax.f32 %v2235_v27, 0.0  ;;  %v2469_v51 = vmax.f32 %v1731_v31, 0.0 }
 0x198   :  { %v2731_v30 = vadd.f32 %v2730_v26, %v2466_v19  ;;  %v2879_v36 = vadd.f32 %v2878_v28, %v2594_v23  ;;  %v2597_v48 = vmax.f32 %v2243_v37, 0.0 }
 0x199   :  { %v3488_v34 = vpop.f32.mrb[96].mxu0  ;;  %v3616_v38 = vpop.f32.mrb[96].mxu1 }
 0x19a   :  { %v1735_v39 = vpop.f32.mrb[97].mxu0  ;;  %v2732_v41 = vadd.f32 %v2731_v30, %v2467_v29  ;;  %v2247_v42 = vpop.f32.mrb[97].mxu1  ;;  %v2880_v44 = vadd.f32 %v2879_v36, %v2595_v33  ;;  %v2256_v53 = vadd.f32 %v4471_v45, %v3616_v38  ;;  %v1744_v57 = vadd.f32 %v4471_v45, %v3488_v34 }
 0x19b   :  { %v3489_v43 = vpop.f32.mrb[98].mxu0  ;;  %v1736_v46 = vadd.f32 %v4471_v45, %v1735_v39  ;;  %v2248_v47 = vadd.f32 %v4471_v45, %v2247_v42  ;;  %v3617_v49 = vpop.f32.mrb[98].mxu1 }
 0x19c   :  { %v1738_v50 = vpop.f32.mrb[99].mxu0  ;;  %v2733_v52 = vadd.f32 %v2732_v41, %v2468_v40  ;;  %v2250_v54 = vpop.f32.mrb[99].mxu1  ;;  %v2881_v56 = vadd.f32 %v2880_v44, %v2596_v35  ;;  %v1747_v0 = vadd.f32 %v4471_v45, %v3489_v43  ;;  %v2600_v3 = vmax.f32 %v2256_v53, 0.0 }
 0x19d   :  { %v1739_v58 = vadd.f32 %v4471_v45, %v1738_v50  ;;  %v2598_v60 = vmax.f32 %v2248_v47, 0.0  ;;  %v2251_v61 = vadd.f32 %v4471_v45, %v2250_v54  ;;  %v2470_v63 = vmax.f32 %v1736_v46, 0.0 }
 0x19e   :  { %v2734_v59 = vadd.f32 %v2733_v52, %v2469_v51  ;;  %v4563_v62 = vadd.f32 %v2881_v56, %v2597_v48  ;;  %v2259_v4 = vadd.f32 %v4471_v45, %v3617_v49  ;;  %v2472_v7 = vmax.f32 %v1744_v57, 0.0 }
 0x19f   :  { %v2471_v1 = vmax.f32 %v1739_v58, 0.0  ;;  %v2599_v5 = vmax.f32 %v2251_v61, 0.0  ;;  %v2473_v18 = vmax.f32 %v1747_v0, 0.0 }
 0x1a0   :  { %v2735_v2 = vrot.slane %v2734_v59, 4  ;;  %v2601_v24 = vmax.f32 %v2259_v4, 0.0 }
 0x1a1   :  { %v3492_v6 = vpop.f32.mrb[100].mxu0  ;;  %v2741_v8 = vadd.f32 %v2471_v1, %v2470_v63  ;;  %v3620_v14 = vpop.f32.mrb[100].mxu1  ;;  %v2889_v12 = vadd.f32 %v2599_v5, %v2598_v60 }
 0x1a2   :  { %v1751_v10 = vpop.f32.mrb[101].mxu0  ;;  %v2736_v11 = vadd.f32 %v2735_v2, %v2734_v59  ;;  %v2263_v15 = vpop.f32.mrb[101].mxu1  ;;  %v2272_v28 = vadd.f32 %v4471_v45, %v3620_v14  ;;  %v1760_v33 = vadd.f32 %v4471_v45, %v3492_v6 }
 0x1a3   :  { %v1752_v13 = vadd.f32 %v4471_v45, %v1751_v10  ;;  %v3493_v16 = vpop.f32.mrb[102].mxu0  ;;  %v2742_v19 = vadd.f32 %v2741_v8, %v2472_v7  ;;  %v2264_v20 = vadd.f32 %v4471_v45, %v2263_v15  ;;  %v3621_v21 = vpop.f32.mrb[102].mxu1  ;;  %v2890_v25 = vadd.f32 %v2889_v12, %v2600_v3 }
 0x1a4   :  { %v1754_v22 = vpop.f32.mrb[103].mxu0  ;;  %v2737_v23 = vrot.slane %v2736_v11, 2  ;;  %v2266_v27 = vpop.f32.mrb[103].mxu1  ;;  %v1763_v40 = vadd.f32 %v4471_v45, %v3493_v16  ;;  %v2604_v43 = vmax.f32 %v2272_v28, 0.0  ;;  %v2275_v44 = vadd.f32 %v4471_v45, %v3621_v21 }
 0x1a5   :  { %v2474_v26 = vmax.f32 %v1752_v13, 0.0  ;;  %v2743_v29 = vadd.f32 %v2742_v19, %v2473_v18  ;;  %v2602_v30 = vmax.f32 %v2264_v20, 0.0  ;;  %v2891_v34 = vadd.f32 %v2890_v25, %v2601_v24 }
 0x1a6   :  { %v2738_v31 = vadd.f32 %v2737_v23, %v2736_v11  ;;  %v1755_v35 = vadd.f32 %v4471_v45, %v1754_v22  ;;  %v2267_v37 = vadd.f32 %v4471_v45, %v2266_v27  ;;  %v2476_v51 = vmax.f32 %v1760_v33, 0.0 }
 0x1a7   :  { %v2744_v36 = vadd.f32 %v2743_v29, %v2474_v26  ;;  %v2892_v39 = vadd.f32 %v2891_v34, %v2602_v30  ;;  %v2477_v61 = vmax.f32 %v1763_v40, 0.0  ;;  %v2605_v2 = vmax.f32 %v2275_v44, 0.0 }
 0x1a8   :  { %v2739_v38 = vrot.slane %v2738_v31, 1  ;;  %v2475_v41 = vmax.f32 %v1755_v35, 0.0  ;;  %v2603_v46 = vmax.f32 %v2267_v37, 0.0 }
 0x1a9   :  { %v3496_v42 = vpop.f32.mrb[104].mxu0  ;;  %v3624_v47 = vpop.f32.mrb[104].mxu1 }
 0x1aa   :  { %v1767_v49 = vpop.f32.mrb[105].mxu0  ;;  %v2740_v50 = vadd.f32 %v2739_v38, %v2738_v31  ;;  %v2745_v52 = vadd.f32 %v2744_v36, %v2475_v41  ;;  %v2279_v54 = vpop.f32.mrb[105].mxu1  ;;  %v2893_v56 = vadd.f32 %v2892_v39, %v2603_v46  ;;  %v2288_v4 = vadd.f32 %v4471_v45, %v3624_v47 }
 0x1ab   :  { %v1768_v53 = vadd.f32 %v4471_v45, %v1767_v49  ;;  %v3497_v48 = vpop.f32.mrb[106].mxu0  ;;  %v2280_v57 = vadd.f32 %v4471_v45, %v2279_v54  ;;  %v3625_v58 = vpop.f32.mrb[106].mxu1  ;;  %v1776_v6 = vadd.f32 %v4471_v45, %v3496_v42 }
 0x1ac   :  { %v1770_v59 = vpop.f32.mrb[107].mxu0  ;;  %v2935_v60 = vmul.f32 %v4501_v9, %v2740_v50  ;;  %v2746_v63 = vadd.f32 %v2745_v52, %v2476_v51  ;;  %v2282_v1 = vpop.f32.mrb[107].mxu1  ;;  %v2894_v3 = vadd.f32 %v2893_v56, %v2604_v43  ;;  %v1779_v11 = vadd.f32 %v4471_v45, %v3497_v48 }
 0x1ad   :  { %v2478_v0 = vmax.f32 %v1768_v53, 0.0  ;;  %v2606_v5 = vmax.f32 %v2280_v57, 0.0  ;;  %v1771_v8 = vadd.f32 %v4471_v45, %v1770_v59  ;;  %v2283_v14 = vadd.f32 %v4471_v45, %v2282_v1 }
 0x1ae   :  { %v2747_v7 = vadd.f32 %v2746_v63, %v2477_v61  ;;  %v2895_v10 = vadd.f32 %v2894_v3, %v2605_v2  ;;  %v2952_v12 = vrot.slane %v2935_v60, 6  ;;  %v2291_v15 = vadd.f32 %v4471_v45, %v3625_v58 }
 0x1af   :  { %v2479_v16 = vmax.f32 %v1771_v8, 0.0  ;;  %v2607_v18 = vmax.f32 %v2283_v14, 0.0  ;;  %v2608_v20 = vmax.f32 %v2288_v4, 0.0  ;;  %v2480_v25 = vmax.f32 %v1776_v6, 0.0 }
 0x1b0   :  { %v2748_v13 = vadd.f32 %v2747_v7, %v2478_v0  ;;  %v2896_v21 = vadd.f32 %v2895_v10, %v2606_v5  ;;  %v4586_v24 = vsel %vm2953_vm3, %v2952_v12, %v4515_v55  ;;  %v2481_v35 = vmax.f32 %v1779_v11, 0.0 }
 0x1b1   :  { %v3500_v19 = vpop.f32.mrb[108].mxu0  ;;  %v3628_v22 = vpop.f32.mrb[108].mxu1  ;;  %v2609_v36 = vmax.f32 %v2291_v15, 0.0 }
 0x1b2   :  { %v1783_v23 = vpop.f32.mrb[109].mxu0  ;;  %v2749_v26 = vadd.f32 %v2748_v13, %v2479_v16  ;;  %v2295_v28 = vpop.f32.mrb[109].mxu1  ;;  %v2897_v30 = vadd.f32 %v2896_v21, %v2607_v18  ;;  %v2304_v55 = vadd.f32 %v4471_v45, %v3628_v22  ;;  %v1792_v43 = vadd.f32 %v4471_v45, %v3500_v19 }
 0x1b3   :  { %v1784_v27 = vadd.f32 %v4471_v45, %v1783_v23  ;;  %v3501_v29 = vpop.f32.mrb[110].mxu0  ;;  %v2296_v31 = vadd.f32 %v4471_v45, %v2295_v28  ;;  %v3629_v33 = vpop.f32.mrb[110].mxu1 }
 0x1b4   :  { %v1786_v34 = vpop.f32.mrb[111].mxu0  ;;  %v2750_v37 = vadd.f32 %v2749_v26, %v2480_v25  ;;  %v2298_v39 = vpop.f32.mrb[111].mxu1  ;;  %v2898_v40 = vadd.f32 %v2897_v30, %v2608_v20  ;;  %v1795_v51 = vadd.f32 %v4471_v45, %v3501_v29  ;;  %v2307_v52 = vadd.f32 %v4471_v45, %v3629_v33 }
 0x1b5   :  { %v2482_v38 = vmax.f32 %v1784_v27, 0.0  ;;  %v2610_v41 = vmax.f32 %v2296_v31, 0.0  ;;  %v1787_v42 = vadd.f32 %v4471_v45, %v1786_v34  ;;  %v2299_v46 = vadd.f32 %v4471_v45, %v2298_v39 }
 0x1b6   :  { %v2751_v44 = vadd.f32 %v2750_v37, %v2481_v35  ;;  %v2899_v47 = vadd.f32 %v2898_v40, %v2609_v36  ;;  %v2612_v48 = vmax.f32 %v2304_v55, 0.0  ;;  %v2484_v59 = vmax.f32 %v1792_v43, 0.0 }
 0x1b7   :  { %v2483_v49 = vmax.f32 %v1787_v42, 0.0  ;;  %v2611_v53 = vmax.f32 %v2299_v46, 0.0  ;;  %v2485_v5 = vmax.f32 %v1795_v51, 0.0  ;;  %v2613_v6 = vmax.f32 %v2307_v52, 0.0 }
 0x1b8   :  { %v2752_v50 = vadd.f32 %v2751_v44, %v2482_v38  ;;  %v2900_v56 = vadd.f32 %v2899_v47, %v2610_v41 }
 0x1b9   :  { %v3504_v54 = vpop.f32.mrb[112].mxu0  ;;  %v3632_v57 = vpop.f32.mrb[112].mxu1 }
 0x1ba   :  { %v1799_v58 = vpop.f32.mrb[113].mxu0  ;;  %v2753_v60 = vadd.f32 %v2752_v50, %v2483_v49  ;;  %v2311_v63 = vpop.f32.mrb[113].mxu1  ;;  %v2901_v1 = vadd.f32 %v2900_v56, %v2611_v53  ;;  %v2320_v11 = vadd.f32 %v4471_v45, %v3632_v57  ;;  %v1808_v15 = vadd.f32 %v4471_v45, %v3504_v54 }
 0x1bb   :  { %v1800_v61 = vadd.f32 %v4471_v45, %v1799_v58  ;;  %v3505_v0 = vpop.f32.mrb[114].mxu0  ;;  %v2312_v2 = vadd.f32 %v4471_v45, %v2311_v63  ;;  %v3633_v3 = vpop.f32.mrb[114].mxu1 }
 0x1bc   :  { %v1802_v4 = vpop.f32.mrb[115].mxu0  ;;  %v2754_v7 = vadd.f32 %v2753_v60, %v2484_v59  ;;  %v2314_v14 = vpop.f32.mrb[115].mxu1  ;;  %v2902_v10 = vadd.f32 %v2901_v1, %v2612_v48  ;;  %v1811_v22 = vadd.f32 %v4471_v45, %v3505_v0  ;;  %v2323_v23 = vadd.f32 %v4471_v45, %v3633_v3 }
 0x1bd   :  { %v2486_v8 = vmax.f32 %v1800_v61, 0.0  ;;  %v2614_v12 = vmax.f32 %v2312_v2, 0.0  ;;  %v1803_v13 = vadd.f32 %v4471_v45, %v1802_v4  ;;  %v2315_v18 = vadd.f32 %v4471_v45, %v2314_v14 }
 0x1be   :  { %v2755_v16 = vadd.f32 %v2754_v7, %v2485_v5  ;;  %v2903_v19 = vadd.f32 %v2902_v10, %v2613_v6  ;;  %v2616_v27 = vmax.f32 %v2320_v11, 0.0  ;;  %v2488_v31 = vmax.f32 %v1808_v15, 0.0 }
 0x1bf   :  { %v2487_v20 = vmax.f32 %v1803_v13, 0.0  ;;  %v2615_v25 = vmax.f32 %v2315_v18, 0.0  ;;  %v2489_v55 = vmax.f32 %v1811_v22, 0.0  ;;  %v2617_v41 = vmax.f32 %v2323_v23, 0.0 }
 0x1c0   :  { %v2756_v21 = vadd.f32 %v2755_v16, %v2486_v8  ;;  %v2904_v28 = vadd.f32 %v2903_v19, %v2614_v12  ;;  %v3784_v19 = vld [vmem:[%s4642_s2] ss:$0 sm:$0xff] }
 0x1c1   :  { %v3508_v26 = vpop.f32.mrb[116].mxu0  ;;  %v3636_v29 = vpop.f32.mrb[116].mxu1 }
 0x1c2   :  { %v1815_v30 = vpop.f32.mrb[117].mxu0  ;;  %v2757_v33 = vadd.f32 %v2756_v21, %v2487_v20  ;;  %v2327_v35 = vpop.f32.mrb[117].mxu1  ;;  %v2905_v37 = vadd.f32 %v2904_v28, %v2615_v25  ;;  %v2336_v47 = vadd.f32 %v4471_v45, %v3636_v29  ;;  %v1824_v51 = vadd.f32 %v4471_v45, %v3508_v26 }
 0x1c3   :  { %v1816_v34 = vadd.f32 %v4471_v45, %v1815_v30  ;;  %v3509_v36 = vpop.f32.mrb[118].mxu0  ;;  %v2328_v38 = vadd.f32 %v4471_v45, %v2327_v35  ;;  %v3637_v39 = vpop.f32.mrb[118].mxu1 }
 0x1c4   :  { %v1818_v40 = vpop.f32.mrb[119].mxu0  ;;  %v2758_v42 = vadd.f32 %v2757_v33, %v2488_v31  ;;  %v2330_v44 = vpop.f32.mrb[119].mxu1  ;;  %v2906_v46 = vadd.f32 %v2905_v37, %v2616_v27  ;;  %v1827_v57 = vadd.f32 %v4471_v45, %v3509_v36  ;;  %v2339_v58 = vadd.f32 %v4471_v45, %v3637_v39 }
 0x1c5   :  { %v2490_v43 = vmax.f32 %v1816_v34, 0.0  ;;  %v2618_v49 = vmax.f32 %v2328_v38, 0.0  ;;  %v1819_v50 = vadd.f32 %v4471_v45, %v1818_v40  ;;  %v2331_v53 = vadd.f32 %v4471_v45, %v2330_v44 }
 0x1c6   :  { %v2759_v52 = vadd.f32 %v2758_v42, %v2489_v55  ;;  %v2907_v54 = vadd.f32 %v2906_v46, %v2617_v41  ;;  %v2620_v61 = vmax.f32 %v2336_v47, 0.0  ;;  %v2492_v2 = vmax.f32 %v1824_v51, 0.0 }
 0x1c7   :  { %v2491_v48 = vmax.f32 %v1819_v50, 0.0  ;;  %v2619_v59 = vmax.f32 %v2331_v53, 0.0  ;;  %v2493_v11 = vmax.f32 %v1827_v57, 0.0  ;;  %v2621_v12 = vmax.f32 %v2339_v58, 0.0 }
 0x1c8   :  { %v2760_v56 = vadd.f32 %v2759_v52, %v2490_v43  ;;  %v2908_v63 = vadd.f32 %v2907_v54, %v2618_v49  ;;  %v2809_v38 = vrot.slane %v4413_v17, 4  ;;  %v2846_v43 = vrot.slane %v4487_v32, 4 }
 0x1c9   :  { %v3512_v60 = vpop.f32.mrb[120].mxu0  ;;  %v3640_v0 = vpop.f32.mrb[120].mxu1  ;;  %v2883_v44 = vrot.slane %v4563_v62, 4 }
 0x1ca   :  { %v1831_v1 = vpop.f32.mrb[121].mxu0  ;;  %v2761_v3 = vadd.f32 %v2760_v56, %v2491_v48  ;;  %v2343_v5 = vpop.f32.mrb[121].mxu1  ;;  %v2909_v7 = vadd.f32 %v2908_v63, %v2619_v59  ;;  %v2352_v20 = vadd.f32 %v3784_v19, %v3640_v0  ;;  %v1840_v23 = vadd.f32 %v3784_v19, %v3512_v60 }
 0x1cb   :  { %v1832_v4 = vadd.f32 %v4471_v45, %v1831_v1  ;;  %v3513_v6 = vpop.f32.mrb[122].mxu0  ;;  %v2344_v8 = vadd.f32 %v4471_v45, %v2343_v5  ;;  %v3641_v14 = vpop.f32.mrb[122].mxu1  ;;  %v2810_v0 = vadd.f32 %v2809_v38, %v4413_v17 }
 0x1cc   :  { %v1834_v10 = vpop.f32.mrb[123].mxu0  ;;  %v2762_v13 = vadd.f32 %v2761_v3, %v2492_v2  ;;  %v2346_v16 = vpop.f32.mrb[123].mxu1  ;;  %v2910_v18 = vadd.f32 %v2909_v7, %v2620_v61  ;;  %v1843_v29 = vadd.f32 %v3784_v19, %v3513_v6  ;;  %v2355_v30 = vadd.f32 %v3784_v19, %v3641_v14 }
 0x1cd   :  { %v2494_v15 = vmax.f32 %v1832_v4, 0.0  ;;  %v2622_v21 = vmax.f32 %v2344_v8, 0.0  ;;  %v1835_v22 = vadd.f32 %v3784_v19, %v1834_v10  ;;  %v2347_v26 = vadd.f32 %v3784_v19, %v2346_v16 }
 0x1ce   :  { %v2763_v25 = vadd.f32 %v2762_v13, %v2493_v11  ;;  %v2911_v27 = vadd.f32 %v2910_v18, %v2621_v12  ;;  %v2624_v34 = vmax.f32 %v2352_v20, 0.0  ;;  %v2496_v39 = vmax.f32 %v1840_v23, 0.0 }
 0x1cf   :  { %v2495_v45 = vmax.f32 %v1835_v22, 0.0  ;;  %v2623_v31 = vmax.f32 %v2347_v26, 0.0  ;;  %v2497_v51 = vmax.f32 %v1843_v29, 0.0  ;;  %v2625_v52 = vmax.f32 %v2355_v30, 0.0 }
 0x1d0   :  { %v2764_v28 = vadd.f32 %v2763_v25, %v2494_v15  ;;  %v2912_v35 = vadd.f32 %v2911_v27, %v2622_v21  ;;  %v2847_v3 = vadd.f32 %v2846_v43, %v4487_v32  ;;  %v2884_v7 = vadd.f32 %v2883_v44, %v4563_v62 }
 0x1d1   :  { %v3516_v33 = vpop.f32.mrb[124].mxu0  ;;  %v3644_v36 = vpop.f32.mrb[124].mxu1  ;;  %v2811_v13 = vrot.slane %v2810_v0, 2 }
 0x1d2   :  { %v1847_v37 = vpop.f32.mrb[125].mxu0  ;;  %v2765_v40 = vadd.f32 %v2764_v28, %v2495_v45  ;;  %v2359_v41 = vpop.f32.mrb[125].mxu1  ;;  %v2913_v46 = vadd.f32 %v2912_v35, %v2623_v31  ;;  %v2368_v57 = vadd.f32 %v3784_v19, %v3644_v36  ;;  %v1856_v60 = vadd.f32 %v3784_v19, %v3516_v33 }
 0x1d3   :  { %v1848_v55 = vadd.f32 %v3784_v19, %v1847_v37  ;;  %v3517_v42 = vpop.f32.mrb[126].mxu0  ;;  %v2360_v47 = vadd.f32 %v3784_v19, %v2359_v41  ;;  %v3645_v49 = vpop.f32.mrb[126].mxu1  ;;  %v2848_v16 = vrot.slane %v2847_v3, 2  ;;  %v2885_v17 = vrot.slane %v2884_v7, 2 }
 0x1d4   :  { %v1850_v50 = vpop.f32.mrb[127].mxu0  ;;  %v2766_v53 = vadd.f32 %v2765_v40, %v2496_v39  ;;  %v2362_v48 = vpop.f32.mrb[127].mxu1  ;;  %v2914_v56 = vadd.f32 %v2913_v46, %v2624_v34  ;;  %v1859_v5 = vadd.f32 %v3784_v19, %v3517_v42  ;;  %v2628_v8 = vmax.f32 %v2368_v57, 0.0 }
 0x1d5   :  { %v2498_v54 = vmax.f32 %v1848_v55, 0.0  ;;  %v2626_v58 = vmax.f32 %v2360_v47, 0.0  ;;  %v1851_v59 = vadd.f32 %v3784_v19, %v1850_v50  ;;  %v2363_v63 = vadd.f32 %v3784_v19, %v2362_v48 }
 0x1d6   :  { %v2767_v61 = vadd.f32 %v2766_v53, %v2497_v51  ;;  %v2915_v1 = vadd.f32 %v2914_v56, %v2625_v52  ;;  %v2371_v10 = vadd.f32 %v3784_v19, %v3645_v49  ;;  %v2500_v11 = vmax.f32 %v1856_v60, 0.0  ;;  %v3785_v49 = vld [vmem:[%s4643_s3] ss:$0 sm:$0xff]  ;;  %s3786_s3 = smov 127  }
 0x1d7   :  { %v2499_v2 = vmax.f32 %v1851_v59, 0.0  ;;  %v2627_v6 = vmax.f32 %v2363_v63, 0.0  ;;  %v2501_v18 = vmax.f32 %v1859_v5, 0.0  ;;  %v2812_v32 = vadd.f32 %v2811_v13, %v2810_v0  ;;  %v3257_v60 = vld [vmem:[%s4644_s4] ss:$0 sm:$0xff] }
 0x1d8   :  { %v2768_v4 = vadd.f32 %v2767_v61, %v2498_v54  ;;  %v2916_v14 = vadd.f32 %v2915_v1, %v2626_v58  ;;  %v2629_v21 = vmax.f32 %v2371_v10, 0.0  ;;  %v2849_v26 = vadd.f32 %v2848_v16, %v2847_v3 }
 0x1d9   :  { %v2886_v62 = vadd.f32 %v2885_v17, %v2884_v7  ;;  %v2813_v29 = vrot.slane %v2812_v32, 1 }
 0x1da   :  { %v2769_v12 = vadd.f32 %v2768_v4, %v2499_v2  ;;  %v2917_v15 = vadd.f32 %v2916_v14, %v2627_v6  ;;  %v2850_v30 = vrot.slane %v2849_v26, 1 }
 0x1db   :  { %v2887_v33 = vrot.slane %v2886_v62, 1  ;;  %v2814_v36 = vadd.f32 %v2813_v29, %v2812_v32 }
 0x1dc   :  { %v2770_v20 = vadd.f32 %v2769_v12, %v2500_v11  ;;  %v2918_v22 = vadd.f32 %v2917_v15, %v2628_v8  ;;  %v2851_v39 = vadd.f32 %v2850_v30, %v2849_v26 }
 0x1dd   :  { %v2888_v40 = vadd.f32 %v2887_v33, %v2886_v62  ;;  %v2937_v43 = vmul.f32 %v4501_v9, %v2814_v36 }
 0x1de   :  { %v2771_v23 = vadd.f32 %v2770_v20, %v2501_v18  ;;  %v2919_v25 = vadd.f32 %v2918_v22, %v2629_v21  ;;  %v2938_v46 = vmul.f32 %v4501_v9, %v2851_v39 }
 0x1df   :  { %v2939_v47 = vmul.f32 %v4501_v9, %v2888_v40  ;;  %v2958_v52 = vrot.slane %v2937_v43, 4 }
 0x1e0   :  { %v2772_v27 = vrot.slane %v2771_v23, 4  ;;  %v2920_v45 = vrot.slane %v2919_v25, 4  ;;  %v2961_v54 = vrot.slane %v2938_v46, 3 }
 0x1e1   :  { %v2964_v56 = vrot.slane %v2939_v47, 2 }
 0x1e2   :  { %v2773_v28 = vadd.f32 %v2772_v27, %v2771_v23  ;;  %v2921_v19 = vadd.f32 %v2920_v45, %v2919_v25 }
 0x1e4   :  { %v2774_v31 = vrot.slane %v2773_v28, 2  ;;  %v2922_v34 = vrot.slane %v2921_v19, 2 }
 0x1e6   :  { %v2775_v35 = vadd.f32 %v2774_v31, %v2773_v28  ;;  %v2923_v37 = vadd.f32 %v2922_v34, %v2921_v19 }
 0x1e8   :  { %v2776_v38 = vrot.slane %v2775_v35, 1  ;;  %v2924_v55 = vrot.slane %v2923_v37, 1 }
 0x1ea   :  { %v2777_v41 = vadd.f32 %v2776_v38, %v2775_v35  ;;  %v2925_v42 = vadd.f32 %v2924_v55, %v2923_v37 }
 0x1ec   :  { %v2936_v44 = vmul.f32 %v4501_v9, %v2777_v41  ;;  %v2940_v50 = vmul.f32 %v3785_v49, %v2925_v42 }
 0x1ee   :  { %v2955_v51 = vrot.slane %v2936_v44, 5  ;;  %v2967_v58 = vrot.slane %v2940_v50, 1 }
 0x1f0   :  { %v2957_v53 = vsel %vm2956_vm4, %v2955_v51, %v4586_v24  ;;  %v2973_v24 = vld [vmem:[%s4645_s5] sm:$0xff] }
 0x1f1   :  { %v2960_v48 = vsel %vm2959_vm5, %v2958_v52, %v2957_v53  ;;  %vm2974_vm9 = vcmp.gt.f32.partialorder %v2973_v24, 0.0 }
 0x1f2   :  { %v2963_v57 = vsel %vm2962_vm6, %v2961_v54, %v2960_v48 }
 0x1f3   :  { %v2966_v9 = vsel %vm2965_vm7, %v2964_v56, %v2963_v57 }
 0x1f4   :  { %v2969_v59 = vsel %vm2968_vm8, %v2967_v58, %v2966_v9 }
 0x1f5   :  { %2971 = vadd.xlane.f32.xlu0 %v2969_v59 }
 0x20b   :  { %2982 = vrot.lane.b32.xlu0 %v3257_v60, %s3786_s3 }
 0x282   :  { %v2972_v61 = vpop.xlane.xlu0 %2971 }
 0x286   :  { %v2983_v63 = vpop.permute.xlu0 %2982 }
 0x287   :  { %v2985_v0 = vsel %vm2974_vm9, %v2983_v63, %v3257_v60 }
 0x288   :  { %v2986_v1 = vadd.f32 %v2985_v0, %v2972_v61 }
 0x28a   :  { %v3258_v2 = vmul.f32 -1.442695, %v2986_v1 }
 0x28c   :  { %3779 = vpow2.f32 %v3258_v2 }
 0x296   :  { %v3780_v3 = vpop.eup %3779 }
 0x297   :  { %v2990_v4 = vadd.f32 1.0, %v3780_v3 }
 0x299   :  { %3781 = vrcp.f32 %v2990_v4 }
 0x2a3   :  { %v3782_v5 = vpop.eup %3781 }
 0x2a4   :  { %2994 = vst.msk [vmem:[%s4646_s6] sm:$0xff] %vm2993_vm10, %v3782_v5 }

</bundles_post_ra>
